<compile_context>
chip_gen: v7x
topology: tpu7x:2x2x1
jax: 0.10.0
libtpu: 0.0.40
codegen_flags: <defaults>
</compile_context>

<pallas_src>
import math
import functools

import jax
import jax.numpy as jnp
from jax.experimental import pallas as pl
from jax.experimental.pallas import tpu as pltpu


def _exp_normal_smearing_kernel(dist_ref, means_ref, betas_ref, out_ref, *,
                                cutoff_lower, cutoff_upper, alpha):
    # dist_ref:  (1, tile_e)        edges on the lane axis
    # means_ref: (num_rbf, 1)
    # betas_ref: (num_rbf, 1)
    # out_ref:   (num_rbf, tile_e)  lane-dense output tile
    num_rbf, tile_e = out_ref.shape

    d = dist_ref[...]                                              # (1, tile_e)

    # CosineCutoff: the module always constructs CosineCutoff(0, cutoff_upper), so the
    # lower==0 branch is the correct (and only) one regardless of cutoff_lower.
    cut = 0.5 * (jnp.cos(d * (math.pi / cutoff_upper)) + 1.0)
    cut = jnp.where(d < cutoff_upper, cut, jnp.zeros_like(cut))    # single select, no cast+mul
    e = jnp.exp(alpha * (cutoff_lower - d))                        # (1, tile_e)

    # Hoist broadcasts: JAX does not CSE broadcast_in_dim, so splat each per-edge row
    # (sublane broadcast) and each per-RBF column (lane splat) exactly once per tile.
    cut_b = jnp.broadcast_to(cut, (num_rbf, tile_e))
    e_b = jnp.broadcast_to(e, (num_rbf, tile_e))
    means_b = jnp.broadcast_to(means_ref[...], (num_rbf, tile_e))
    betas_b = jnp.broadcast_to(betas_ref[...], (num_rbf, tile_e))

    diff = e_b - means_b
    out_ref[...] = (cut_b * jnp.exp(-betas_b * diff * diff)).astype(out_ref.dtype)


def exp_normal_smearing(dist, means, betas, *,
                        cutoff_lower=0.0, cutoff_upper=5.0,
                        tile_e=2048, out_dtype=None):
    """dist: (E,) float32 -> (E, num_rbf).

    out_dtype may be set to jnp.bfloat16 on v6e/v7x to halve output writeback if the
    accuracy budget allows; default matches the input dtype (f32 reference numerics).
    """
    E = dist.shape[0]
    num_rbf = means.shape[0]
    alpha = 5.0 / (cutoff_upper - cutoff_lower)
    out_dtype = dist.dtype if out_dtype is None else out_dtype

    # Pad E up to a multiple of tile_e; the padded tail is computed and sliced off.
    E_pad = ((E + tile_e - 1) // tile_e) * tile_e
    if E_pad != E:
        dist = jnp.pad(dist, (0, E_pad - E))

    dist_2d = dist.reshape(1, E_pad)            # edge axis is lane-dense
    means_2d = means.reshape(num_rbf, 1)
    betas_2d = betas.reshape(num_rbf, 1)

    kernel = functools.partial(
        _exp_normal_smearing_kernel,
        cutoff_lower=cutoff_lower,
        cutoff_upper=cutoff_upper,
        alpha=alpha,
    )

    grid = (E_pad // tile_e,)

    # Double-buffered footprint of one grid step (out tile dominates) + headroom,
    # clamped to a sane range (v5e scoped default is only 16 MiB).
    tile_bytes = 4 * (num_rbf * tile_e + tile_e + 2 * num_rbf)
    vmem_limit = int(min(max(4 * tile_bytes + (2 << 20), 16 << 20), 96 << 20))

    out_t = pl.pallas_call(
        kernel,
        out_shape=jax.ShapeDtypeStruct((num_rbf, E_pad), out_dtype),
        grid_spec=pltpu.PrefetchScalarGridSpec(
            num_scalar_prefetch=0,
            grid=grid,
            in_specs=[
                pl.BlockSpec((1, tile_e), lambda i: (0, i)),         # dist tile
                pl.BlockSpec((num_rbf, 1), lambda i: (0, 0)),        # means (resident)
                pl.BlockSpec((num_rbf, 1), lambda i: (0, 0)),        # betas (resident)
            ],
            out_specs=pl.BlockSpec((num_rbf, tile_e), lambda i: (0, i)),
        ),
        compiler_params=pltpu.CompilerParams(
            dimension_semantics=("parallel",),
            vmem_limit_bytes=vmem_limit,
        ),
    )(dist_2d, means_2d, betas_2d)

    # Back to the PyTorch forward's (E, num_rbf) layout; drop the padded tail.
    return out_t[:, :E].T


def make_initial_params(cutoff_lower=0.0, cutoff_upper=5.0, num_rbf=50,
                        dtype=jnp.float32):
    """Deterministic parameter init matching ExpNormalSmearing._initial_params."""
    start_value = math.exp(-cutoff_upper + cutoff_lower)
    means = jnp.linspace(start_value, 1.0, num_rbf, dtype=dtype)
    betas = jnp.full((num_rbf,), (2.0 / num_rbf * (1.0 - start_value)) ** (-2),
                     dtype=dtype)
    return means, betas


def exp_normal_smearing_ref(dist, means, betas, *, cutoff_lower=0.0,
                            cutoff_upper=5.0):
    """Pure-JAX reference mirroring the PyTorch forward."""
    alpha = 5.0 / (cutoff_upper - cutoff_lower)
    d = dist[:, None]
    cutoffs = 0.5 * (jnp.cos(d * math.pi / cutoff_upper) + 1.0)
    cutoffs = cutoffs * (d < cutoff_upper).astype(d.dtype)
    return cutoffs * jnp.exp(-betas[None, :] *
                             (jnp.exp(alpha * (cutoff_lower - d)) - means[None, :]) ** 2)


if __name__ == "__main__":
    cutoff_lower = 0.0
    cutoff_upper = 5.0
    num_rbf = 50
    E = 3000  # not a multiple of tile_e -> exercises the padding path (grid = 2)

    key = jax.random.PRNGKey(0)
    # distances in [0, 1.2 * cutoff_upper) so some lie beyond the cutoff
    dist = jax.random.uniform(key, (E,), dtype=jnp.float32,
                              minval=0.0, maxval=1.2 * cutoff_upper)

    means, betas = make_initial_params(cutoff_lower, cutoff_upper, num_rbf)

    out = exp_normal_smearing(dist, means, betas,
                              cutoff_lower=cutoff_lower,
                              cutoff_upper=cutoff_upper,
                              tile_e=2048)
    out = jax.block_until_ready(out)

    ref = exp_normal_smearing_ref(dist, means, betas,
                                  cutoff_lower=cutoff_lower,
                                  cutoff_upper=cutoff_upper)

    assert out.shape == (E, num_rbf), out.shape
    assert jnp.allclose(out, ref, atol=1e-5, rtol=1e-5), \
        float(jnp.max(jnp.abs(out - ref)))

    print("KERNEL_OK")
</pallas_src>

<mosaic_0001>
module attributes {stable_mosaic.version = 11 : i64} {
  func.func @_exp_normal_smearing_kernel(%arg0: i32, %arg1: memref<1x2048xf32, #tpu.memory_space<vmem>>, %arg2: memref<50x1xf32, #tpu.memory_space<vmem>>, %arg3: memref<50x1xf32, #tpu.memory_space<vmem>>, %arg4: memref<50x2048xf32, #tpu.memory_space<vmem>>) attributes {dimension_semantics = [#tpu.dimension_semantics<parallel>], iteration_bounds = array<i64: 2>, scalar_prefetch = 0 : i64, scratch_operands = 0 : i64, tpu.core_type = #tpu.core_type<tc>, window_params = [{transform_indices = @transform_0, window_bounds = array<i64: 1, 2048>}, {pipeline_mode = #tpu.pipeline_mode<synchronous>, transform_indices = @transform_1, window_bounds = array<i64: 50, 1>}, {pipeline_mode = #tpu.pipeline_mode<synchronous>, transform_indices = @transform_2, window_bounds = array<i64: 50, 1>}, {transform_indices = @transform_3, window_bounds = array<i64: 50, 2048>}]} {
    %c0 = arith.constant 0 : index
    %c0_0 = arith.constant 0 : index
    %0 = vector.load %arg1[%c0, %c0_0] : memref<1x2048xf32, #tpu.memory_space<vmem>>, vector<1x2048xf32>
    %cst = arith.constant 0.628318548 : f32
    %1 = vector.broadcast %cst : f32 to vector<1x2048xf32>
    %2 = arith.mulf %0, %1 : vector<1x2048xf32>
    %3 = math.cos %2 : vector<1x2048xf32>
    %cst_1 = arith.constant 1.000000e+00 : f32
    %4 = vector.broadcast %cst_1 : f32 to vector<1x2048xf32>
    %5 = arith.addf %3, %4 : vector<1x2048xf32>
    %cst_2 = arith.constant 5.000000e-01 : f32
    %6 = vector.broadcast %cst_2 : f32 to vector<1x2048xf32>
    %7 = arith.mulf %6, %5 : vector<1x2048xf32>
    %cst_3 = arith.constant 5.000000e+00 : f32
    %8 = vector.broadcast %cst_3 : f32 to vector<1x2048xf32>
    %9 = arith.cmpf olt, %0, %8 : vector<1x2048xf32>
    %cst_4 = arith.constant 0.000000e+00 : f32
    %10 = vector.broadcast %cst_4 : f32 to vector<1x2048xf32>
    %11 = arith.select %9, %7, %10 : vector<1x2048xi1>, vector<1x2048xf32>
    %cst_5 = arith.constant 0.000000e+00 : f32
    %12 = vector.broadcast %cst_5 : f32 to vector<1x2048xf32>
    %13 = arith.subf %12, %0 : vector<1x2048xf32>
    %cst_6 = arith.constant 1.000000e+00 : f32
    %14 = vector.broadcast %cst_6 : f32 to vector<1x2048xf32>
    %15 = arith.mulf %14, %13 : vector<1x2048xf32>
    %16 = math.exp %15 : vector<1x2048xf32>
    %17 = vector.shape_cast %11 : vector<1x2048xf32> to vector<1x2048xf32>
    %18 = vector.broadcast %17 : vector<1x2048xf32> to vector<50x2048xf32>
    %19 = vector.shape_cast %16 : vector<1x2048xf32> to vector<1x2048xf32>
    %20 = vector.broadcast %19 : vector<1x2048xf32> to vector<50x2048xf32>
    %c0_7 = arith.constant 0 : index
    %c0_8 = arith.constant 0 : index
    %21 = vector.load %arg2[%c0_7, %c0_8] : memref<50x1xf32, #tpu.memory_space<vmem>>, vector<50x1xf32>
    %22 = vector.shape_cast %21 : vector<50x1xf32> to vector<50x1xf32>
    %23 = vector.broadcast %22 : vector<50x1xf32> to vector<50x2048xf32>
    %c0_9 = arith.constant 0 : index
    %c0_10 = arith.constant 0 : index
    %24 = vector.load %arg3[%c0_9, %c0_10] : memref<50x1xf32, #tpu.memory_space<vmem>>, vector<50x1xf32>
    %25 = vector.shape_cast %24 : vector<50x1xf32> to vector<50x1xf32>
    %26 = vector.broadcast %25 : vector<50x1xf32> to vector<50x2048xf32>
    %27 = arith.subf %20, %23 : vector<50x2048xf32>
    %cst_11 = arith.constant 0.000000e+00 : f32
    %28 = vector.broadcast %cst_11 : f32 to vector<50x2048xf32>
    %29 = arith.subf %28, %26 : vector<50x2048xf32>
    %30 = arith.mulf %29, %27 : vector<50x2048xf32>
    %31 = arith.mulf %30, %27 : vector<50x2048xf32>
    %32 = math.exp %31 : vector<50x2048xf32>
    %33 = arith.mulf %18, %32 : vector<50x2048xf32>
    %c0_12 = arith.constant 0 : index
    %c0_13 = arith.constant 0 : index
    %34 = vector.load %arg4[%c0_12, %c0_13] : memref<50x2048xf32, #tpu.memory_space<vmem>>, vector<50x2048xf32>
    tpu.vector_store %arg4[%c0_12, %c0_13], %33 {strides = array<i32>} : memref<50x2048xf32, #tpu.memory_space<vmem>>, vector<50x2048xf32>,
    return
  }
  func.func @transform_0(%arg0: i32) -> (i32, i32) {
    %c0_i32 = arith.constant 0 : i32
    %c0_i32_0 = arith.constant 0 : i32
    return %c0_i32, %arg0 : i32, i32
  }
  func.func @transform_1(%arg0: i32) -> (i32, i32) {
    %c0_i32 = arith.constant 0 : i32
    %c0_i32_0 = arith.constant 0 : i32
    %c0_i32_1 = arith.constant 0 : i32
    return %c0_i32, %c0_i32_0 : i32, i32
  }
  func.func @transform_2(%arg0: i32) -> (i32, i32) {
    %c0_i32 = arith.constant 0 : i32
    %c0_i32_0 = arith.constant 0 : i32
    %c0_i32_1 = arith.constant 0 : i32
    return %c0_i32, %c0_i32_0 : i32, i32
  }
  func.func @transform_3(%arg0: i32) -> (i32, i32) {
    %c0_i32 = arith.constant 0 : i32
    %c0_i32_0 = arith.constant 0 : i32
    return %c0_i32, %arg0 : i32, i32
  }
}

</mosaic_0001>

<bundles_post_ra>
// kernel: tpu_custom_call.1
= control target key start
LH: loop header
LB: loop body
LE: loop exit
PB: predicated region body
PF: predicated region fallthrough
CT: control target
= control target key end

     0   :  { %8 = vsyncpa [#allocation3], 0  ;;  %s3120_s0 = inlined_call_operand.vmem [shape: f32[1,4096], index: 0, kind: input, shape index: {}]   ;;  %s3121_s1 = inlined_call_operand.vmem [shape: f32[50,1], index: 1, kind: input, shape index: {}]   ;;  %s3122_s2 = inlined_call_operand.vmem [shape: f32[50,1], index: 2, kind: input, shape index: {}]   ;;  %s3123_s3 = inlined_call_operand.hbm [shape: f32[50,4096], index: 3, kind: output, shape index: {}]  }
   0x1   :  { %10 = vsyncpa [#allocation3 + $0x1], 0  ;;  %s1914_s12 = smov 0   ;;  %s1916_s13 = smov 0  }
   0x2   :  { %s1918_s14 = smov 0   ;;  %s1920_s15 = smov 0  }
   0x3 LB: > { %s1935_s16 = sadd.s32 4294967295, %s1881_s15   ;;  %s1505_s17 = sadd.s32 4294967294, %s1881_s15   ;;  %s1881_s15 = sphi %s1920_s15, %s3422_s15   ;;  %s1877_s14 = sphi %s1918_s14, %s3421_s14   ;;  %s1873_s13 = sphi %s1916_s13, %s3420_s13   ;;  %s1869_s12 = sphi %s1914_s12, %s3419_s12  }
   0x4   : > { %s1939_s18 = sadd.s32 1, %s1881_s15   ;;  %s91_s19 = sadd.s32 1, %s1877_s14 }
   0x5   : > { %s88_s20 = ssub.s32 %s1881_s15, %s1939_s18  ;;  %p101_p0 = scmp.ne.s32.totalorder %s1877_s14, %s1873_s13 }
   0x6   : > { %p89_p1 = scmp.eq.s32.totalorder %s88_s20, 0  ;;  %p102_p2 = scmp.eq.s32.totalorder %s1935_s16, 1 }
   0x7   : > { %p107_p3 = scmp.ne.s32.totalorder %s1873_s13, %s1869_s12  ;;  %p108_p4 = scmp.eq.s32.totalorder %s1505_s17, 1 }
   0x8   : > { %s1950_s21 = scalar_select %p89_p1, %s1877_s14, %s91_s19  }
   0x9   : > { %p1952_p5 = por %p102_p2, %p101_p0  ;;  %p1956_p6 = por %p108_p4, %p107_p3 }
   0xa   : > { %p1508_p7 = scmp.ge.s32.totalorder %s1881_s15, 1  ;;  %p140_p8 = scmp.lt.s32.totalorder %s1881_s15, 3 }
   0xc   : > { %p141_p9 = pnand %p1508_p7, %p140_p8 }
   0xe   : > { %144 = sbr.rel (%p141_p9) target bundleno = 364 (0x16c), region = 32 }
  0x15   : > { %v559_v0 = vld [vmem:[%s3121_s1 + $0x10] sm:$0xff]  ;;  %v557_v1 = vld [vmem:[%s3121_s1] sm:$0xff]  ;;  %s1509_s28 = sshll.u32 %s1935_s16, 4  ;;  %v1883_v2 = vmov 0   ;;  %v560_v3 = vld [vmem:[%s3121_s1 + $0x18] sm:$0xff]  ;;  %s160_s11 = sand.u32 1, %s1873_s13  }
  0x16   : > { %1582 = vset.pattern.permute.xlu1 %v1883_v2  ;;  %1581 = vset.pattern.permute.xlu0 %v1883_v2  ;;  %p164_p10 = scmp.lt.s32.totalorder %s1509_s28, 31  ;;  %v558_v4 = vld [vmem:[%s3121_s1 + $0x8] sm:$0xff]  ;;  %v561_v8 = vld [vmem:[%s3121_s1 + $0x20] sm:$0xff]  ;;  %v563_v16 = vld [vmem:[%s3121_s1 + $0x30] sm:$0x3]  ;;  %s2593_s17 = smul.u32 896, %s160_s11 }
  0x17   : > { %576 = vperm.xlu1 %1582, %v559_v0   ;;  %566 = vperm.xlu0 %1581, %v557_v1   ;;  %v562_v7 = vld [vmem:[%s3121_s1 + $0x28] sm:$0xff]  ;;  %v599_v15 = vld [vmem:[%s3122_s2] sm:$0xff]  ;;  %v601_v23 = vld [vmem:[%s3122_s2 + $0x10] sm:$0xff]  ;;  %v1884_v39 = vmov 683565275   ;;  %s1522_s20 = sshll.u32 %s1935_s16, 11 }
  0x18   : > { %s3424_s28 = smov (!%p164_p10, %s1509_s28), 31  ;;  %v600_v24 = vld [vmem:[%s3122_s2 + $0x8] sm:$0xff]  ;;  %v603_v29 = vld [vmem:[%s3122_s2 + $0x20] sm:$0xff]  ;;  %v602_v31 = vld [vmem:[%s3122_s2 + $0x18] sm:$0xff]  ;;  %v1885_v41 = vmov 2475754826   ;;  %s3067_s26 = scalar_lea.hbm %s3123_s3, %s1522_s20 }
  0x19   : > { %s166_s8 = scalar_lea.vmem %s3120_s0, %s3424_s28  ;;  %v1886_v43 = vmov 2131351028   ;;  %v1887_v45 = vmov 2102212464   ;;  %v1888_v47 = vmov 920167782  }
  0x1a   : > { %v1978_v5 = vld [vmem:[%s166_s8] sm:$0xff]  ;;  %v1980_v6 = vld [vmem:[%s166_s8 + $0x8] sm:$0xff]  ;;  %v605_v50 = vld [vmem:[%s3122_s2 + $0x30] sm:$0x3]  ;;  %v1889_v57 = vmov 1326507024  }
  0x1b   : > { %581 = vperm.xlu1 %1582, %v560_v3   ;;  %571 = vperm.xlu0 %1581, %v558_v4   ;;  %v1989_v9 = vmul.f32 0.62831855, %v1978_v5  ;;  %v1992_v10 = vmul.f32 0.62831855, %v1980_v6  ;;  %v604_v51 = vld [vmem:[%s3122_s2 + $0x28] sm:$0xff]  ;;  %s2612_s19 = scalar_lea.vmem [#allocation2], %s2593_s17 }
  0x1c   : > { %s1446_s24 = sshll.u32 %s2612_s19, 4  ;;  %s3079_s27 = scalar_lea.sflag [#allocation3], %s160_s11  ;;  %s3071_s24 = int_to_ptr.vmem [resolvable:$true] %s1446_s24 }
  0x1d   : > { %v173_v11 = vand.u32 2147483647, %v1989_v9  ;;  %v176_v12 = vand.u32 2139095040, %v1989_v9  ;;  %v276_v13 = vand.u32 2147483647, %v1992_v10  ;;  %v279_v14 = vand.u32 2139095040, %v1992_v10 }
  0x1e   : > { %vm175_vm14 = vcmp.lt.s32.totalorder %v1989_v9, 0  ;;  %s1819_s28 = scalar_lea.vmem %s3071_s24, 14336  ;;  %s1890_s29 = smov [#allocation2]  }
  0x1f   : > { %591 = vperm.xlu1 %1582, %v562_v7   ;;  %586 = vperm.xlu0 %1581, %v561_v8   ;;  %v177_v17 = vshrl.u32 %v176_v12, 23  ;;  %v180_v18 = vand.u32 8388607, %v173_v11  ;;  %v280_v19 = vshrl.u32 %v279_v14, 23  ;;  %v283_v20 = vand.u32 8388607, %v276_v13  ;;  %p1820_p11 = scmp.ne.s32.totalorder %s3071_s24, %s1819_s28 }
  0x20   : > { %vm174_vm15 = vcmp.le.f32.partialorder %v173_v11, 0.7853982  ;;  %s1823_s30 = sshll.u32 %s1890_s29, 4  ;;  %s1824_s30 = int_to_ptr.vmem [resolvable:$false] %s1823_s30 }
  0x21   : > { %v1510_v21 = vadd.s32 4294967169, %v177_v17  ;;  %v1514_v22 = vadd.s32 4294967169, %v280_v19  ;;  %v181_v26 = vor.u32 8388608, %v180_v18  ;;  %v284_v27 = vor.u32 8388608, %v283_v20  ;;  %p1821_p12 = pnand %p1820_p11, %p1952_p5  ;;  %s1825_s4 = scalar_lea.vmem %s1824_s30, 28672 }
  0x22   : > { %p1826_p0 = scmp.lt.s32.totalorder %s3071_s24, %s1824_s30  ;;  %p1827_p1 = scmp.lt.s32.totalorder %s1825_s4, %s1819_s28 }
  0x23   : > { %608 = vperm.xlu1 %1582, %v599_v15   ;;  %596 = vperm.xlu0 %1581, %v563_v16   ;;  %v183_v25 = vadd.s32 1, %v1510_v21  ;;  %v286_v28 = vadd.s32 1, %v1514_v22  ;;  %v2020_v35 = vshll.u32 %v181_v26, 8  ;;  %v2024_v37 = vshll.u32 %v284_v27, 8  ;;  %p1822_p13 = pneg %p1821_p12 }
  0x24   : > { %p1828_p2 = por %p1827_p1, %p1826_p0 }
  0x25   : > { %vm184_vm0 = vcmp.gt.s32.totalorder %v183_v25, 0  ;;  %vm287_vm1 = vcmp.gt.s32.totalorder %v286_v28, 0 }
  0x26   : > { %v185_v30 = vsel %vm184_vm0, %v183_v25, 0  ;;  %v288_v34 = vsel %vm287_vm1, %v286_v28, 0  ;;  %vm278_vm0 = vcmp.lt.s32.totalorder %v1992_v10, 0  ;;  %p1829_p3 = pnand %p1828_p2, %p1822_p13 }
  0x27   : > { %618 = vperm.xlu1 %1582, %v601_v23   ;;  %613 = vperm.xlu0 %1581, %v600_v24   ;;  %v186_v32 = vshrl.u32 %v185_v30, 5  ;;  %v187_v33 = vand.u32 31, %v185_v30  ;;  %v2022_v36 = vand.u32 31, %v288_v34  ;;  %v2026_v49 = vshrl.u32 %v288_v34, 5 }
  0x29   : > { %v188_v38 = vsub.s32 32, %v187_v33  ;;  %v190_v40 = vshll.u32 %v1884_v39, %v187_v33  ;;  %v193_v42 = vshll.u32 %v1885_v41, %v187_v33  ;;  %v196_v44 = vshll.u32 %v1886_v43, %v187_v33 }
  0x2a   : > { %v199_v46 = vshll.u32 %v1887_v45, %v187_v33  ;;  %v202_v48 = vshll.u32 %v1888_v47, %v187_v33  ;;  %vm205_vm2 = vcmp.lt.s32.totalorder %v186_v32, 1  ;;  %vm206_vm3 = vcmp.lt.s32.totalorder %v186_v32, 2 }
  0x2b   : > { %628 = vperm.xlu1 %1582, %v603_v29   ;;  %623 = vperm.xlu0 %1581, %v602_v31   ;;  %v189_v52 = vshrl.u32 %v1884_v39, %v188_v38  ;;  %v191_v53 = vshrl.u32 %v1885_v41, %v188_v38  ;;  %v194_v54 = vshrl.u32 %v1886_v43, %v188_v38  ;;  %vm208_vm4 = vcmp.lt.s32.totalorder %v186_v32, 4 }
  0x2c   : > { %v197_v55 = vshrl.u32 %v1887_v45, %v188_v38  ;;  %v200_v56 = vshrl.u32 %v1888_v47, %v188_v38  ;;  %v203_v58 = vshrl.u32 %v1889_v57, %v188_v38  ;;  %v291_v62 = vsub.s32 32, %v2022_v36 }
  0x2d   : > { %v192_v59 = vor.u32 %v191_v53, %v190_v40  ;;  %v195_v60 = vor.u32 %v194_v54, %v193_v42  ;;  %vm207_vm5 = vcmp.lt.s32.totalorder %v186_v32, 3  ;;  %v293_v1 = vshll.u32 %v1884_v39, %v2022_v36 }
  0x2e   : > { %v198_v61 = vor.u32 %v197_v55, %v196_v44  ;;  %v201_v63 = vor.u32 %v200_v56, %v199_v46  ;;  %v204_v0 = vor.u32 %v203_v58, %v202_v48  ;;  %vm308_vm6 = vcmp.lt.s32.totalorder %v2026_v49, 1 }
  0x2f   : > { %638 = vperm.xlu1 %1582, %v605_v50   ;;  %633 = vperm.xlu0 %1581, %v604_v51   ;;  %v209_v2 = vsel %vm205_vm2, %v189_v52, %v192_v59  ;;  %v213_v4 = vsel %vm205_vm2, %v192_v59, %v195_v60  ;;  %v292_v17 = vshrl.u32 %v1884_v39, %v291_v62  ;;  %vm309_vm7 = vcmp.lt.s32.totalorder %v2026_v49, 2 }
  0x30   : > { %v210_v3 = vsel %vm208_vm4, %v198_v61, 2102212464  ;;  %v217_v7 = vsel %vm205_vm2, %v195_v60, %v198_v61  ;;  %v214_v12 = vsel %vm208_vm4, %v201_v63, 920167782  ;;  %v218_v14 = vsel %vm208_vm4, %v204_v0, 1326507024 }
  0x31   : > { %v211_v8 = vsel %vm207_vm5, %v195_v60, %v210_v3  ;;  %v215_v15 = vsel %vm207_vm5, %v198_v61, %v214_v12  ;;  %v219_v16 = vsel %vm207_vm5, %v201_v63, %v218_v14  ;;  %v294_v18 = vshrl.u32 %v1885_v41, %v291_v62 }
  0x32   : > { %v212_v19 = vsel %vm206_vm3, %v209_v2, %v211_v8  ;;  %v216_v20 = vsel %vm206_vm3, %v213_v4, %v215_v15  ;;  %v220_v21 = vsel %vm206_vm3, %v217_v7, %v219_v16  ;;  %v296_v22 = vshll.u32 %v1885_v41, %v2022_v36 }
  0x33   : > { %v2048_v23 = vmul.u32.u64.low %v2020_v35, %v220_v21  ;;  %v2049_v24 = vmul.u32.u64.high %v2020_v35, %v220_v21, %v2048_v23  ;;  %v2052_v25 = vmul.u32.u64.low %v2020_v35, %v216_v20  ;;  %v2053_v26 = vmul.u32.u64.high %v2020_v35, %v216_v20, %v2052_v25 }
  0x34   : > { %v295_v27 = vor.u32 %v294_v18, %v293_v1  ;;  %v297_v28 = vshrl.u32 %v1886_v43, %v291_v62  ;;  %v299_v29 = vshll.u32 %v1886_v43, %v2022_v36  ;;  %v300_v30 = vshrl.u32 %v1887_v45, %v291_v62 }
  0x35   : > { %v302_v31 = vshll.u32 %v1887_v45, %v2022_v36  ;;  %v303_v33 = vshrl.u32 %v1888_v47, %v291_v62  ;;  %v305_v32 = vshll.u32 %v1888_v47, %v2022_v36  ;;  %v306_v34 = vshrl.u32 %v1889_v57, %v291_v62 }
  0x36   : > { %v228_v38 = vmul.u32 %v2020_v35, %v212_v19  ;;  %v298_v39 = vor.u32 %v297_v28, %v296_v22  ;;  %v301_v40 = vor.u32 %v300_v30, %v299_v29  ;;  %vm230_vm8 = vc.u32 %v2049_v24, %v2052_v25 }
  0x37   : > { %v231_v41 = vadd.s32 1, %v2053_v26  ;;  %v304_v42 = vor.u32 %v303_v33, %v302_v31  ;;  %vm310_vm9 = vcmp.lt.s32.totalorder %v2026_v49, 3  ;;  %v307_v43 = vor.u32 %v306_v34, %v305_v32 }
  0x38   : > { %vm311_vm10 = vcmp.lt.s32.totalorder %v2026_v49, 4  ;;  %v312_v36 = vsel %vm308_vm6, %v292_v17, %v295_v27  ;;  %v316_v35 = vsel %vm308_vm6, %v295_v27, %v298_v39  ;;  %v320_v47 = vsel %vm308_vm6, %v298_v39, %v301_v40 }
  0x39   : > { %v232_v44 = vsel %vm230_vm8, %v231_v41, %v2053_v26  ;;  %v313_v45 = vsel %vm311_vm10, %v301_v40, 2102212464  ;;  %v317_v46 = vsel %vm311_vm10, %v304_v42, 920167782  ;;  %v321_v52 = vsel %vm311_vm10, %v307_v43, 1326507024 }
  0x3a   : > { %v233_v48 = vadd.s32 %v232_v44, %v228_v38  ;;  %v314_v50 = vsel %vm310_vm9, %v298_v39, %v313_v45  ;;  %v318_v51 = vsel %vm310_vm9, %v301_v40, %v317_v46  ;;  %v322_v55 = vsel %vm310_vm9, %v304_v42, %v321_v52 }
  0x3b   : > { %v315_v53 = vsel %vm309_vm7, %v312_v36, %v314_v50  ;;  %v319_v54 = vsel %vm309_vm7, %v316_v35, %v318_v51  ;;  %v323_v57 = vsel %vm309_vm7, %v320_v47, %v322_v55  ;;  %vm2101_vm3 = vcmp.le.f32.partialorder %v276_v13, 0.7853982 }
  0x3c   : > { %v234_v56 = vadd.s32 536870912, %v233_v48  ;;  %v2078_v58 = vmul.u32.u64.low %v2024_v37, %v319_v54  ;;  %v2079_v59 = vmul.u32.u64.high %v2024_v37, %v319_v54, %v2078_v58  ;;  %v331_v63 = vmul.u32 %v2024_v37, %v315_v53 }
  0x3d   : > { %v2082_v60 = vmul.u32.u64.low %v2024_v37, %v323_v57  ;;  %v2083_v61 = vmul.u32.u64.high %v2024_v37, %v323_v57, %v2082_v60  ;;  %v229_v37 = vadd.s32 %v2052_v25, %v2049_v24  ;;  %vm265_vm5 = vweird.f32 %v1989_v9 }
  0x3e   : > { %v235_v62 = vshrl.u32 %v234_v56, 30  ;;  %v334_v1 = vadd.s32 1, %v2079_v59  ;;  %vm383_vm6 = vcmp.lt.f32.partialorder %v1978_v5, 5.0  ;;  %vm368_vm10 = vweird.f32 %v1992_v10 }
  0x3f   : > { %vm333_vm11 = vc.u32 %v2083_v61, %v2078_v58  ;;  %v332_v34 = vadd.s32 %v2078_v58, %v2083_v61 }
  0x40   : > { %v236_v0 = vshll.u32 %v235_v62, 30  ;;  %v335_v49 = vsel %vm333_vm11, %v334_v1, %v2079_v59  ;;  %v259_v35 = vsub.s32 4, %v235_v62  ;;  %vm384_vm11 = vcmp.lt.f32.partialorder %v1980_v6, 5.0 }
  0x41   : > { %v336_v3 = vadd.s32 %v335_v49, %v331_v63 }
  0x42   : > { %v237_v2 = vsub.s32 %v233_v48, %v236_v0  ;;  %v260_v51 = vsel %vm175_vm14, %v259_v35, %v235_v62 }
  0x43   : > { %v337_v7 = vadd.s32 536870912, %v336_v3  ;;  %v262_v53 = vsel %vm174_vm15, 0, %v260_v51 }
  0x44   : > { %v239_v4 = vsub.s32 0, %v237_v2  ;;  %v266_v55 = vand.u32 3, %v262_v53 }
  0x45   : > { %v2089_v12 = vshrl.u32 %v337_v7, 30 }
  0x46   : > { %v1511_v8 = vmin.u32 %v239_v4, %v237_v2  ;;  %vm271_vm1 = vcmp.eq.s32.totalorder %v266_v55, 2  ;;  %vm268_vm2 = vcmp.eq.s32.totalorder %v266_v55, 0  ;;  %vm267_vm4 = vcmp.lt.s32.totalorder %v266_v55, 2 }
  0x47   : > { %v339_v15 = vshll.u32 %v2089_v12, 30  ;;  %v362_v49 = vsub.s32 4, %v2089_v12 }
  0x48   : > { %v241_v14 = vclz %v1511_v8 }
  0x49   : > { %v340_v17 = vsub.s32 %v336_v3, %v339_v15 }
  0x4a   : > { %v1512_v16 = vadd.s32 4294967294, %v241_v14 }
  0x4b   : > { %v342_v19 = vsub.s32 0, %v340_v17 }
  0x4c   : > { %vm1513_vm12 = vcmp.lt.s32.totalorder %v1512_v16, 0 }
  0x4d   : > { %v244_v18 = vsel %vm1513_vm12, 0, %v1512_v16  ;;  %v1515_v23 = vmin.u32 %v342_v19, %v340_v17  ;;  %v387_v16 = vsub.f32 0.0, %v1978_v5 }
  0x4e   : > { %v245_v20 = vsub.s32 32, %v244_v18  ;;  %v246_v21 = vshll.u32 %v237_v2, %v244_v18  ;;  %v249_v22 = vsub.s32 4294967266, %v244_v18 }
  0x4f   : > { %v344_v28 = vclz %v1515_v23  ;;  %v389_v19 = vmul.f32 1.442695, %v387_v16 }
  0x50   : > { %v247_v26 = vshrl.u32 %v229_v37, %v245_v20  ;;  %v250_v27 = vadd.s32 127, %v249_v22 }
  0x51   : > { %v1516_v31 = vadd.s32 4294967294, %v344_v28 }
  0x52   : > { %v248_v29 = vor.u32 %v247_v26, %v246_v21  ;;  %v251_v30 = vshll.u32 %v250_v27, 23 }
  0x53   : > { %vm1517_vm13 = vcmp.lt.s32.totalorder %v1516_v31, 0 }
  0x54   : > { %v252_v33 = vor.u32 4788187, %v251_v30  ;;  %v255_v32 = vcvt.s32.f32 %v248_v29  ;;  %v347_v24 = vsel %vm1517_vm13, 0, %v1516_v31 }
  0x55   : > { %v348_v25 = vsub.s32 32, %v347_v24  ;;  %v349_v39 = vshll.u32 %v340_v17, %v347_v24  ;;  %v352_v40 = vsub.s32 4294967266, %v347_v24  ;;  %v388_v17 = vsub.f32 0.0, %v1980_v6 }
  0x56   : > { %v253_v38 = vand.u32 2147483647, %v252_v33 }
  0x57   : > { %v350_v42 = vshrl.u32 %v332_v34, %v348_v25  ;;  %v353_v43 = vadd.s32 127, %v352_v40  ;;  %v391_v20 = vmul.f32 1.442695, %v388_v17 }
  0x58   : > { %v256_v41 = vmul.f32 %v255_v32, %v253_v38 }
  0x59   : > { %v351_v44 = vor.u32 %v350_v42, %v349_v39  ;;  %v354_v45 = vshll.u32 %v353_v43, 23 }
  0x5a   : > { %v257_v36 = vxor.u32 2147483648, %v256_v41 }
  0x5b   : > { %v355_v48 = vor.u32 4788187, %v354_v45  ;;  %v358_v50 = vcvt.s32.f32 %v351_v44 }
  0x5c   : > { %v258_v46 = vsel %vm175_vm14, %v257_v36, %v256_v41 }
  0x5d   : > { %v261_v47 = vsel %vm174_vm15, %v1989_v9, %v258_v46  ;;  %v356_v52 = vand.u32 2147483647, %v355_v48  ;;  %v363_v9 = vsel %vm278_vm0, %v362_v49, %v2089_v12  ;;  %v395_v12 = vlaneseq }
  0x5e   : > { %1583 = vcosq.f32 %v261_v47  ;;  %v365_v7 = vsel %vm2101_vm3, 0, %v363_v9 }
  0x5f   : > { %1585 = vsinq.f32 %v261_v47  ;;  %v359_v54 = vmul.f32 %v358_v50, %v356_v52  ;;  %v369_v15 = vand.u32 3, %v365_v7  ;;  %v396_v27 = vshrl.u32 %v395_v12, 7 }
  0x61   : > { %v360_v56 = vxor.u32 2147483648, %v359_v54  ;;  %vm371_vm7 = vcmp.eq.s32.totalorder %v369_v15, 0  ;;  %vm374_vm8 = vcmp.eq.s32.totalorder %v369_v15, 2  ;;  %vm370_vm9 = vcmp.lt.s32.totalorder %v369_v15, 2 }
  0x62   : > { %v397_v28 = vsub.s32 0, %v396_v27  ;;  %v401_v29 = vsub.s32 1, %v396_v27  ;;  %v405_v31 = vsub.s32 2, %v396_v27  ;;  %v409_v33 = vsub.s32 3, %v396_v27 }
  0x63   : > { %v361_v60 = vsel %vm278_vm0, %v360_v56, %v359_v54  ;;  %v413_v32 = vsub.s32 4, %v396_v27  ;;  %v417_v34 = vsub.s32 5, %v396_v27  ;;  %v421_v38 = vsub.s32 6, %v396_v27 }
  0x64   : > { %v364_v0 = vsel %vm2101_vm3, %v1992_v10, %v361_v60  ;;  %v425_v24 = vsub.s32 7, %v396_v27 }
  0x65   : > { %1587 = vcosq.f32 %v364_v0 }
  0x66   : > { %1589 = vsinq.f32 %v364_v0 }
  0x67   : > { %1591 = vpow2.f32 %v389_v19 }
  0x68   : > { %v1584_v11 = vpop.eup %1583  ;;  %1593 = vpow2.f32 %v391_v20 }
  0x69   : > { %v1586_v57 = vpop.eup %1585  ;;  %v272_v58 = vxor.u32 2147483648, %v1584_v11 }
  0x6a   : > { %v269_v61 = vxor.u32 2147483648, %v1586_v57 }
  0x6b   : > { %v273_v62 = vsel %vm271_vm1, %v272_v58, %v1586_v57 }
  0x6c   : > { %v270_v63 = vsel %vm268_vm2, %v1584_v11, %v269_v61 }
  0x6d   : > { %v274_v1 = vsel %vm267_vm4, %v270_v63, %v273_v62 }
  0x6e   : > { %v275_v2 = vsel %vm265_vm5, nan, %v274_v1 }
  0x6f   : > { %v379_v13 = vadd.f32 1.0, %v275_v2  ;;  %v1588_v8 = vpop.eup %1587 }
  0x70   : > { %v1590_v14 = vpop.eup %1589  ;;  %v375_v18 = vxor.u32 2147483648, %v1588_v8 }
  0x71   : > { %v381_v3 = vmul.f32 0.5, %v379_v13  ;;  %v372_v37 = vxor.u32 2147483648, %v1590_v14  ;;  %v1592_v30 = vpop.eup %1591 }
  0x72   : > { %v376_v22 = vsel %vm374_vm8, %v375_v18, %v1590_v14  ;;  %v1594_v25 = vpop.eup %1593  ;;  %v2122_v40 = vrot.slane %v1592_v30, %v397_v28  ;;  %v2124_v10 = vrot.slane %v1592_v30, %v401_v29  ;;  %v2126_v41 = vrot.slane %v1592_v30, %v405_v31 }
  0x73   : > { %v385_v4 = vsel %vm383_vm6, %v381_v3, 0.0  ;;  %v373_v21 = vsel %vm371_vm7, %v1588_v8, %v372_v37  ;;  %v2128_v42 = vrot.slane %v1592_v30, %v409_v33  ;;  %v2130_v43 = vrot.slane %v1592_v30, %v413_v32 }
  0x74   : > { %v377_v23 = vsel %vm370_vm9, %v373_v21, %v376_v22  ;;  %v2132_v36 = vrot.slane %v1592_v30, %v417_v34  ;;  %v2134_v35 = vrot.slane %v1592_v30, %v421_v38  ;;  %v2136_v44 = vrot.slane %v1592_v30, %v425_v24 }
  0x75   : > { %v378_v26 = vsel %vm368_vm10, nan, %v377_v23  ;;  %v2138_v45 = vrot.slane %v1594_v25, %v397_v28  ;;  %v2140_v46 = vrot.slane %v1594_v25, %v401_v29  ;;  %v2142_v47 = vrot.slane %v1594_v25, %v405_v31 }
  0x76   : > { %v380_v5 = vadd.f32 1.0, %v378_v26  ;;  %v2144_v48 = vrot.slane %v1594_v25, %v409_v33  ;;  %v2146_v50 = vrot.slane %v1594_v25, %v413_v32  ;;  %v2148_v51 = vrot.slane %v385_v4, %v397_v28 }
  0x77   : > { %v2150_v52 = vrot.slane %v1594_v25, %v417_v34  ;;  %v2152_v53 = vrot.slane %v1594_v25, %v421_v38  ;;  %v2154_v54 = vrot.slane %v1594_v25, %v425_v24  ;;  %v2156_v55 = vrot.slane %v385_v4, %v401_v29 }
  0x78   : > { %v382_v39 = vmul.f32 0.5, %v380_v5  ;;  %v2158_v56 = vrot.slane %v385_v4, %v405_v31  ;;  %v2160_v11 = vrot.slane %v385_v4, %v409_v33  ;;  %v2162_v57 = vrot.slane %v385_v4, %v413_v32 }
  0x79   : > { %v2164_v59 = vrot.slane %v385_v4, %v417_v34  ;;  %v2166_v60 = vrot.slane %v385_v4, %v421_v38  ;;  %v2168_v61 = vrot.slane %v385_v4, %v425_v24 }
  0x7a   : > { %v386_v6 = vsel %vm384_vm11, %v382_v39, 0.0  ;;  %3225 = vst [vmem:[#allocation5_spill] sm:$0xff] %v2158_v56  ;;  %3226 = vst [vmem:[#allocation6_spill] sm:$0xff] %v2160_v11 }
  0x7b   : > { %3227 = vst [vmem:[#allocation7_spill] sm:$0xff] %v2162_v57  ;;  %3228 = vst [vmem:[#allocation8_spill] sm:$0xff] %v2164_v59  ;;  %v2170_v62 = vrot.slane %v386_v6, %v397_v28  ;;  %v2172_v63 = vrot.slane %v386_v6, %v401_v29  ;;  %v2174_v0 = vrot.slane %v386_v6, %v405_v31 }
  0x7c   : > { %3229 = vst [vmem:[#allocation9_spill] sm:$0xff] %v2166_v60  ;;  %3230 = vst [vmem:[#allocation10_spill] sm:$0xff] %v2168_v61  ;;  %v2176_v1 = vrot.slane %v386_v6, %v409_v33  ;;  %v2178_v2 = vrot.slane %v386_v6, %v413_v32  ;;  %v2180_v13 = vrot.slane %v386_v6, %v417_v34 }
  0x7d   : > { %3231 = vst [vmem:[#allocation11_spill] sm:$0xff] %v2170_v62  ;;  %3232 = vst [vmem:[#allocation12_spill] sm:$0xff] %v2172_v63  ;;  %v2182_v49 = vrot.slane %v386_v6, %v421_v38  ;;  %v2184_v3 = vrot.slane %v386_v6, %v425_v24 }
  0x7e   : > { %3233 = vst [vmem:[#allocation13_spill] sm:$0xff] %v2174_v0  ;;  %3234 = vst [vmem:[#allocation14_spill] sm:$0xff] %v2176_v1 }
  0x7f   : > { %3235 = vst [vmem:[#allocation15_spill] sm:$0xff] %v2178_v2  ;;  %3236 = vst [vmem:[#allocation16_spill] sm:$0xff] %v2180_v13 }
  0x80   : > { %3237 = vst [vmem:[#allocation17_spill] sm:$0xff] %v2182_v49  ;;  %3238 = vst [vmem:[#allocation18_spill] sm:$0xff] %v2184_v3 }
  0x96   : > { %v577_v58 = vpop.permute.xlu1 %576  ;;  %v567_v15 = vpop.permute.xlu0 %566 }
  0x97   : > { %v2187_v9 = vsub.f32 %v2122_v40, %v577_v58  ;;  %v2190_v4 = vsub.f32 %v2124_v10, %v577_v58  ;;  %v2193_v7 = vsub.f32 %v2126_v41, %v577_v58  ;;  %v2196_v8 = vsub.f32 %v2128_v42, %v577_v58 }
  0x98   : > { %v2199_v14 = vsub.f32 %v2130_v43, %v577_v58  ;;  %v2202_v16 = vsub.f32 %v2132_v36, %v577_v58  ;;  %v2205_v17 = vsub.f32 %v2134_v35, %v577_v58  ;;  %v2208_v37 = vsub.f32 %v2136_v44, %v577_v58 }
  0x99   : > { %v2211_v18 = vsub.f32 %v2138_v45, %v577_v58  ;;  %v2214_v19 = vsub.f32 %v2140_v46, %v577_v58  ;;  %v2217_v20 = vsub.f32 %v2142_v47, %v577_v58  ;;  %v2220_v21 = vsub.f32 %v2144_v48, %v577_v58 }
  0x9a   : > { %v2223_v22 = vsub.f32 %v2146_v50, %v577_v58  ;;  %v2226_v12 = vsub.f32 %v2150_v52, %v577_v58  ;;  %v2229_v23 = vsub.f32 %v2152_v53, %v577_v58  ;;  %v2232_v26 = vsub.f32 %v2154_v54, %v577_v58  ;;  %v582_v5 = vpop.permute.xlu1 %581  ;;  %v572_v13 = vpop.permute.xlu0 %571 }
  0x9b   : > { %3239 = vst [vmem:[#allocation19_spill] sm:$0xff] %v2220_v21  ;;  %v2235_v27 = vsub.f32 %v2122_v40, %v567_v15  ;;  %v2238_v28 = vsub.f32 %v2124_v10, %v567_v15  ;;  %v2241_v29 = vsub.f32 %v2126_v41, %v567_v15  ;;  %v2244_v30 = vsub.f32 %v2128_v42, %v567_v15 }
  0x9c   : > { %3240 = vst [vmem:[#allocation20_spill] sm:$0xff] %v2223_v22  ;;  %3241 = vst [vmem:[#allocation21_spill] sm:$0xff] %v2226_v12  ;;  %v2247_v31 = vsub.f32 %v2130_v43, %v567_v15  ;;  %v2250_v33 = vsub.f32 %v2132_v36, %v567_v15  ;;  %v2253_v32 = vsub.f32 %v2134_v35, %v567_v15 }
  0x9d   : > { %3242 = vst [vmem:[#allocation22_spill] sm:$0xff] %v2229_v23  ;;  %3243 = vst [vmem:[#allocation23_spill] sm:$0xff] %v2232_v26  ;;  %v2256_v34 = vsub.f32 %v2136_v44, %v567_v15  ;;  %v2259_v38 = vsub.f32 %v2138_v45, %v567_v15  ;;  %v2262_v24 = vsub.f32 %v2122_v40, %v582_v5 }
  0x9e   : > { %v2265_v25 = vsub.f32 %v2124_v10, %v582_v5  ;;  %v2268_v39 = vsub.f32 %v2126_v41, %v582_v5  ;;  %v2271_v6 = vsub.f32 %v2128_v42, %v582_v5  ;;  %v2274_v58 = vsub.f32 %v2130_v43, %v582_v5  ;;  %v592_v2 = vpop.permute.xlu1 %591  ;;  %v2357_v60 = vpop.permute.xlu0 %586 }
  0x9f   : > { %3244 = vst [vmem:[#allocation24_spill] sm:$0xff] %v2262_v24  ;;  %v2277_v3 = vsub.f32 %v2132_v36, %v582_v5  ;;  %v2280_v49 = vsub.f32 %v2134_v35, %v582_v5  ;;  %v2283_v24 = vsub.f32 %v2136_v44, %v582_v5  ;;  %v2334_v1 = vsub.f32 %v2124_v10, %v572_v13 }
  0xa0   : > { %3245 = vst [vmem:[#allocation25_spill] sm:$0xff] %v2265_v25  ;;  %3246 = vst [vmem:[#allocation26_spill] sm:$0xff] %v2268_v39  ;;  %v2286_v25 = vsub.f32 %v2138_v45, %v582_v5  ;;  %v2289_v39 = vsub.f32 %v2140_v46, %v582_v5  ;;  %v2337_v0 = vsub.f32 %v2126_v41, %v572_v13 }
  0xa1   : > { %3247 = vst [vmem:[#allocation27_spill] sm:$0xff] %v2271_v6  ;;  %3248 = vst [vmem:[#allocation28_spill] sm:$0xff] %v2274_v58  ;;  %v2292_v6 = vsub.f32 %v2142_v47, %v582_v5  ;;  %v2295_v58 = vsub.f32 %v2144_v48, %v582_v5  ;;  %v2340_v63 = vsub.f32 %v2128_v42, %v572_v13 }
  0xa2   : > { %3249 = vst [vmem:[#allocation29_spill] sm:$0xff] %v2277_v3  ;;  %3250 = vst [vmem:[#allocation30_spill] sm:$0xff] %v2280_v49  ;;  %v2298_v3 = vsub.f32 %v2146_v50, %v582_v5  ;;  %v2301_v49 = vsub.f32 %v2150_v52, %v582_v5  ;;  %v2343_v62 = vsub.f32 %v2130_v43, %v572_v13 }
  0xa3   : > { %3251 = vst [vmem:[#allocation31_spill] sm:$0xff] %v2283_v24  ;;  %3252 = vst [vmem:[#allocation32_spill] sm:$0xff] %v2286_v25  ;;  %v2304_v24 = vsub.f32 %v2152_v53, %v582_v5  ;;  %v2307_v25 = vsub.f32 %v2154_v54, %v582_v5  ;;  %v2328_v5 = vsub.f32 %v2154_v54, %v567_v15 }
  0xa4   : > { %3253 = vst [vmem:[#allocation33_spill] sm:$0xff] %v2289_v39  ;;  %3254 = vst [vmem:[#allocation34_spill] sm:$0xff] %v2292_v6  ;;  %v2310_v39 = vsub.f32 %v2140_v46, %v567_v15  ;;  %v2313_v6 = vsub.f32 %v2142_v47, %v567_v15  ;;  %v2346_v61 = vsub.f32 %v2132_v36, %v572_v13 }
  0xa5   : > { %3255 = vst [vmem:[#allocation35_spill] sm:$0xff] %v2295_v58  ;;  %3256 = vst [vmem:[#allocation36_spill] sm:$0xff] %v2298_v3  ;;  %v2316_v58 = vsub.f32 %v2144_v48, %v567_v15  ;;  %v2319_v3 = vsub.f32 %v2146_v50, %v567_v15 }
  0xa6   : > { %3257 = vst [vmem:[#allocation37_spill] sm:$0xff] %v2301_v49  ;;  %3258 = vst [vmem:[#allocation38_spill] sm:$0xff] %v2304_v24  ;;  %v2322_v49 = vsub.f32 %v2150_v52, %v567_v15  ;;  %v2325_v24 = vsub.f32 %v2152_v53, %v567_v15  ;;  %v2349_v15 = vsub.f32 %v2134_v35, %v572_v13 }
  0xa7   : > { %3259 = vst [vmem:[#allocation39_spill] sm:$0xff] %v2307_v25  ;;  %v2331_v25 = vsub.f32 %v2122_v40, %v572_v13  ;;  %3261 = vst [vmem:[#allocation41_spill] sm:$0xff] %v2334_v1  ;;  %v2355_v1 = vsub.f32 %v2138_v45, %v572_v13 }
  0xa8   : > { %3262 = vst [vmem:[#allocation42_spill] sm:$0xff] %v2337_v0  ;;  %3263 = vst [vmem:[#allocation43_spill] sm:$0xff] %v2340_v63  ;;  %v2360_v0 = vsub.f32 %v2122_v40, %v592_v2  ;;  %v2363_v63 = vsub.f32 %v2124_v10, %v592_v2 }
  0xa9   : > { %3260 = vst [vmem:[#allocation40_spill] sm:$0xff] %v2331_v25  ;;  %3264 = vst [vmem:[#allocation44_spill] sm:$0xff] %v2343_v62  ;;  %v2352_v25 = vsub.f32 %v2136_v44, %v572_v13  ;;  %v2366_v62 = vsub.f32 %v2126_v41, %v592_v2 }
  0xaa   : > { %3265 = vst [vmem:[#allocation45_spill] sm:$0xff] %v2346_v61  ;;  %3266 = vst [vmem:[#allocation46_spill] sm:$0xff] %v2349_v15  ;;  %v2369_v61 = vsub.f32 %v2128_v42, %v592_v2  ;;  %v2372_v15 = vsub.f32 %v2130_v43, %v592_v2 }
  0xab   : > { %3267 = vst [vmem:[#allocation47_spill] sm:$0xff] %v2352_v25  ;;  %3268 = vst [vmem:[#allocation48_spill] sm:$0xff] %v2355_v1  ;;  %v2375_v25 = vsub.f32 %v2132_v36, %v592_v2  ;;  %v2378_v1 = vsub.f32 %v2134_v35, %v592_v2 }
  0xac   : > { %3269 = vst [vmem:[#allocation49_spill] sm:$0xff] %v2360_v0  ;;  %3270 = vst [vmem:[#allocation50_spill] sm:$0xff] %v2363_v63  ;;  %v2381_v0 = vsub.f32 %v2136_v44, %v592_v2  ;;  %v2384_v63 = vsub.f32 %v2138_v45, %v592_v2 }
  0xad   : > { %3271 = vst [vmem:[#allocation51_spill] sm:$0xff] %v2366_v62  ;;  %3272 = vst [vmem:[#allocation52_spill] sm:$0xff] %v2369_v61  ;;  %v2387_v62 = vsub.f32 %v2140_v46, %v592_v2  ;;  %v2390_v61 = vsub.f32 %v2142_v47, %v592_v2 }
  0xae   : > { %3273 = vst [vmem:[#allocation53_spill] sm:$0xff] %v2372_v15  ;;  %3274 = vst [vmem:[#allocation54_spill] sm:$0xff] %v2375_v25  ;;  %v2393_v15 = vsub.f32 %v2144_v48, %v592_v2  ;;  %v2396_v25 = vsub.f32 %v2146_v50, %v592_v2 }
  0xaf   : > { %3275 = vst [vmem:[#allocation55_spill] sm:$0xff] %v2378_v1  ;;  %3276 = vst [vmem:[#allocation56_spill] sm:$0xff] %v2381_v0  ;;  %v2399_v1 = vsub.f32 %v2150_v52, %v592_v2  ;;  %v2402_v0 = vsub.f32 %v2152_v53, %v592_v2 }
  0xb0   : > { %3277 = vst [vmem:[#allocation57_spill] sm:$0xff] %v2384_v63  ;;  %3278 = vst [vmem:[#allocation58_spill] sm:$0xff] %v2387_v62  ;;  %v2405_v63 = vsub.f32 %v2154_v54, %v592_v2  ;;  %v2408_v62 = vsub.f32 %v2140_v46, %v572_v13  ;;  %v2426_v2 = vsub.f32 %v2154_v54, %v572_v13 }
  0xb1   : > { %3279 = vst [vmem:[#allocation59_spill] sm:$0xff] %v2390_v61  ;;  %3280 = vst [vmem:[#allocation60_spill] sm:$0xff] %v2393_v15  ;;  %v2411_v61 = vsub.f32 %v2142_v47, %v572_v13  ;;  %v2414_v15 = vsub.f32 %v2144_v48, %v572_v13 }
  0xb2   : > { %3281 = vst [vmem:[#allocation61_spill] sm:$0xff] %v2396_v25  ;;  %3282 = vst [vmem:[#allocation62_spill] sm:$0xff] %v2399_v1  ;;  %v2417_v25 = vsub.f32 %v2146_v50, %v572_v13  ;;  %v2420_v1 = vsub.f32 %v2150_v52, %v572_v13 }
  0xb3   : > { %3283 = vst [vmem:[#allocation63_spill] sm:$0xff] %v2402_v0  ;;  %3284 = vst [vmem:[#allocation64_spill] sm:$0xff] %v2405_v63  ;;  %v2423_v0 = vsub.f32 %v2152_v53, %v572_v13  ;;  %v2430_v63 = vsub.f32 %v2122_v40, %v2357_v60  ;;  %v2448_v13 = vsub.f32 %v2130_v43, %v2357_v60 }
  0xb4   : > { %3285 = vst [vmem:[#allocation65_spill] sm:$0xff] %v2408_v62  ;;  %3286 = vst [vmem:[#allocation66_spill] sm:$0xff] %v2411_v61  ;;  %v609_v61 = vpop.permute.xlu1 %608  ;;  %v2432_v62 = vpop.permute.xlu0 %596 }
  0xb5   : > { %3287 = vst [vmem:[#allocation67_spill] sm:$0xff] %v2414_v15  ;;  %3288 = vst [vmem:[#allocation68_spill] sm:$0xff] %v2417_v25  ;;  %v2436_v15 = vsub.f32 %v2124_v10, %v2357_v60 }
  0xb6   : > { %3289 = vst [vmem:[#allocation69_spill] sm:$0xff] %v2420_v1  ;;  %3290 = vst [vmem:[#allocation70_spill] sm:$0xff] %v2423_v0  ;;  %v2440_v1 = vsub.f32 %v2126_v41, %v2357_v60  ;;  %v2444_v0 = vsub.f32 %v2128_v42, %v2357_v60 }
  0xb7   : > { %3291 = vst [vmem:[#allocation71_spill] sm:$0xff] %v2426_v2  ;;  %3292 = vst [vmem:[#allocation72_spill] sm:$0xff] %v2430_v63  ;;  %v2452_v63 = vsub.f32 %v2132_v36, %v2357_v60  ;;  %v2456_v2 = vsub.f32 %v2134_v35, %v2357_v60 }
  0xb8   : > { %3293 = vst [vmem:[#allocation73_spill] sm:$0xff] %v2436_v15  ;;  %3294 = vst [vmem:[#allocation74_spill] sm:$0xff] %v2440_v1  ;;  %v2460_v15 = vsub.f32 %v2136_v44, %v2357_v60  ;;  %v2464_v1 = vsub.f32 %v2138_v45, %v2357_v60 }
  0xb9   : > { %3295 = vst [vmem:[#allocation75_spill] sm:$0xff] %v2444_v0  ;;  %3296 = vst [vmem:[#allocation76_spill] sm:$0xff] %v2448_v13  ;;  %v753_v0 = vsub.f32 0.0, %v609_v61  ;;  %v2468_v13 = vsub.f32 %v2122_v40, %v2432_v62  ;;  %v2488_v40 = vsub.f32 %v2132_v36, %v2432_v62  ;;  %v2507_v36 = vsub.f32 %v2144_v48, %v2357_v60 }
  0xba   : > { %3297 = vst [vmem:[#allocation77_spill] sm:$0xff] %v2452_v63  ;;  %3298 = vst [vmem:[#allocation78_spill] sm:$0xff] %v2456_v2  ;;  %v2472_v63 = vsub.f32 %v2124_v10, %v2432_v62  ;;  %v2476_v2 = vsub.f32 %v2126_v41, %v2432_v62  ;;  %v2492_v10 = vsub.f32 %v2134_v35, %v2432_v62 }
  0xbb   : > { %3299 = vst [vmem:[#allocation79_spill] sm:$0xff] %v2460_v15  ;;  %3300 = vst [vmem:[#allocation80_spill] sm:$0xff] %v2464_v1  ;;  %v2480_v15 = vsub.f32 %v2128_v42, %v2432_v62  ;;  %v2484_v1 = vsub.f32 %v2130_v43, %v2432_v62  ;;  %v2496_v41 = vsub.f32 %v2140_v46, %v2357_v60 }
  0xbc   : > { %3301 = vst [vmem:[#allocation81_spill] sm:$0xff] %v2468_v13  ;;  %3302 = vst [vmem:[#allocation82_spill] sm:$0xff] %v2472_v63  ;;  %v760_v61 = vmul.f32 %v753_v0, %v2235_v27  ;;  %v761_v42 = vmul.f32 %v753_v0, %v2238_v28  ;;  %v2503_v43 = vsub.f32 %v2142_v47, %v2357_v60 }
  0xbd   : > { %3303 = vst [vmem:[#allocation83_spill] sm:$0xff] %v2476_v2  ;;  %3304 = vst [vmem:[#allocation84_spill] sm:$0xff] %v2480_v15  ;;  %v762_v15 = vmul.f32 %v753_v0, %v2241_v29  ;;  %v2511_v35 = vsub.f32 %v2146_v50, %v2357_v60  ;;  %v764_v2 = vmul.f32 %v753_v0, %v2247_v31 }
  0xbe   : > { %3305 = vst [vmem:[#allocation85_spill] sm:$0xff] %v2484_v1  ;;  %3306 = vst [vmem:[#allocation86_spill] sm:$0xff] %v2488_v40  ;;  %v2516_v40 = vsub.f32 %v2150_v52, %v2357_v60  ;;  %v2520_v1 = vsub.f32 %v2152_v53, %v2357_v60  ;;  %v765_v63 = vmul.f32 %v753_v0, %v2250_v33 }
  0xbf   : > { %3307 = vst [vmem:[#allocation87_spill] sm:$0xff] %v2492_v10  ;;  %3308 = vst [vmem:[#allocation88_spill] sm:$0xff] %v2496_v41  ;;  %v763_v10 = vmul.f32 %v753_v0, %v2244_v30  ;;  %v766_v13 = vmul.f32 %v753_v0, %v2253_v32  ;;  %v770_v41 = vmul.f32 %v753_v0, %v2313_v6 }
  0xc0   : > { %3309 = vst [vmem:[#allocation89_spill] sm:$0xff] %v2503_v43  ;;  %3310 = vst [vmem:[#allocation90_spill] sm:$0xff] %v2507_v36  ;;  %v767_v36 = vmul.f32 %v753_v0, %v2256_v34  ;;  %v769_v43 = vmul.f32 %v753_v0, %v2310_v39  ;;  %v873_v25 = vmul.f32 %v761_v42, %v2238_v28 }
  0xc1   : > { %3311 = vst [vmem:[#allocation91_spill] sm:$0xff] %v2511_v35  ;;  %3312 = vst [vmem:[#allocation92_spill] sm:$0xff] %v2516_v40  ;;  %v768_v35 = vmul.f32 %v753_v0, %v2259_v38  ;;  %v872_v40 = vmul.f32 %v760_v61, %v2235_v27  ;;  %v771_v26 = vmul.f32 %v753_v0, %v2316_v58 }
  0xc2   : > { %3313 = vst [vmem:[#allocation93_spill] sm:$0xff] %v2520_v1  ;;  %v874_v1 = vmul.f32 %v762_v15, %v2241_v29  ;;  %v772_v59 = vmul.f32 %v753_v0, %v2319_v3  ;;  %v773_v57 = vmul.f32 %v753_v0, %v2322_v49  ;;  %v875_v23 = vmul.f32 %v763_v10, %v2244_v30 }
  0xc3   : > { %v774_v12 = vmul.f32 %v753_v0, %v2325_v24  ;;  %v775_v11 = vmul.f32 %v753_v0, %v2328_v5  ;;  %v876_v22 = vmul.f32 %v764_v2, %v2247_v31  ;;  %v877_v27 = vmul.f32 %v765_v63, %v2250_v33 }
  0xc4   : > { %v878_v28 = vmul.f32 %v766_v13, %v2253_v32  ;;  %v879_v29 = vmul.f32 %v767_v36, %v2256_v34  ;;  %v880_v15 = vmul.f32 %v768_v35, %v2259_v38  ;;  %v881_v61 = vmul.f32 %v769_v43, %v2310_v39 }
  0xc5   : > { %v984_v42 = vmul.f32 1.442695, %v872_v40  ;;  %v986_v21 = vmul.f32 1.442695, %v873_v25  ;;  %v988_v56 = vmul.f32 1.442695, %v874_v1  ;;  %v2546_v30 = vsub.f32 %v2136_v44, %v2432_v62 }
  0xc6   : > { %v882_v0 = vmul.f32 %v770_v41, %v2313_v6  ;;  %v883_v31 = vmul.f32 %v771_v26, %v2316_v58  ;;  %v990_v63 = vmul.f32 1.442695, %v875_v23  ;;  %v2552_v33 = vsub.f32 %v2138_v45, %v2432_v62  ;;  %v619_v6 = vpop.permute.xlu1 %618 }
  0xc7   : > { %v884_v32 = vmul.f32 %v772_v59, %v2319_v3  ;;  %v885_v34 = vmul.f32 %v773_v57, %v2322_v49  ;;  %1595 = vpow2.f32 %v984_v42  ;;  %v992_v1 = vmul.f32 1.442695, %v876_v22  ;;  %v3322_v42 = vld [vmem:[#allocation5_spill] sm:$0xff] }
  0xc8   : > { %3314 = vst [vmem:[#allocation94_spill] sm:$0xff] %v2552_v33  ;;  %v886_v38 = vmul.f32 %v774_v12, %v2325_v24  ;;  %v887_v44 = vmul.f32 %v775_v11, %v2328_v5  ;;  %1597 = vpow2.f32 %v986_v21  ;;  %v994_v25 = vmul.f32 1.442695, %v877_v27 }
  0xc9   : > { %1599 = vpow2.f32 %v988_v56  ;;  %v996_v26 = vmul.f32 1.442695, %v878_v28  ;;  %v998_v39 = vmul.f32 1.442695, %v879_v29  ;;  %v1000_v23 = vmul.f32 1.442695, %v880_v15 }
  0xca   : > { %1601 = vpow2.f32 %v990_v63  ;;  %v1002_v45 = vmul.f32 1.442695, %v881_v61  ;;  %v2561_v57 = vsub.f32 %v2140_v46, %v2432_v62  ;;  %v2565_v59 = vsub.f32 %v2142_v47, %v2432_v62 }
  0xcb   : > { %1603 = vpow2.f32 %v992_v1  ;;  %v2569_v56 = vsub.f32 %v2144_v48, %v2432_v62  ;;  %v2573_v11 = vsub.f32 %v2146_v50, %v2432_v62  ;;  %v2577_v49 = vsub.f32 %v2150_v52, %v2432_v62  ;;  %v614_v48 = vpop.permute.xlu0 %613 }
  0xcc   : > { %3315 = vst [vmem:[#allocation95_spill] sm:$0xff] %v2561_v57  ;;  %3316 = vst [vmem:[#allocation96_spill] sm:$0xff] %v2565_v59  ;;  %1605 = vpow2.f32 %v994_v25  ;;  %v2581_v46 = vsub.f32 %v2152_v53, %v2432_v62  ;;  %v2585_v47 = vsub.f32 %v2154_v54, %v2432_v62  ;;  %v755_v3 = vsub.f32 0.0, %v619_v6  ;;  %v3326_v25 = vld [vmem:[#allocation21_spill] sm:$0xff] }
  0xcd   : > { %3317 = vst [vmem:[#allocation97_spill] sm:$0xff] %v2569_v56  ;;  %3318 = vst [vmem:[#allocation98_spill] sm:$0xff] %v2573_v11  ;;  %v2589_v21 = vsub.f32 %v2154_v54, %v2357_v60  ;;  %1607 = vpow2.f32 %v996_v26  ;;  %v1004_v50 = vmul.f32 1.442695, %v882_v0  ;;  %v1006_v52 = vmul.f32 1.442695, %v883_v31 }
  0xce   : > { %3319 = vst [vmem:[#allocation99_spill] sm:$0xff] %v2577_v49  ;;  %3320 = vst [vmem:[#allocation100_spill] sm:$0xff] %v2581_v46  ;;  %1609 = vpow2.f32 %v998_v39  ;;  %v1008_v22 = vmul.f32 1.442695, %v884_v32  ;;  %v1010_v53 = vmul.f32 1.442695, %v885_v34  ;;  %v792_v62 = vmul.f32 %v755_v3, %v2187_v9 }
  0xcf   : > { %3321 = vst [vmem:[#allocation101_spill] sm:$0xff] %v2585_v47  ;;  %v1012_v12 = vmul.f32 1.442695, %v886_v38  ;;  %1611 = vpow2.f32 %v1000_v23  ;;  %v1014_v24 = vmul.f32 1.442695, %v887_v44  ;;  %v2596_v58 = vsub.f32 0.0, %v614_v48 }
  0xd0   : > { %1613 = vpow2.f32 %v1002_v45  ;;  %v793_v54 = vmul.f32 %v755_v3, %v2190_v4  ;;  %v794_v60 = vmul.f32 %v755_v3, %v2193_v7  ;;  %v795_v5 = vmul.f32 %v755_v3, %v2196_v8  ;;  %v3323_v31 = vld [vmem:[#allocation19_spill] sm:$0xff]  ;;  %v3324_v32 = vld [vmem:[#allocation20_spill] sm:$0xff]  ;;  %v3325_v38 = vld [vmem:[#allocation6_spill] sm:$0xff] }
  0xd1   : > { %v1596_v2 = vpop.eup %1595  ;;  %1615 = vpow2.f32 %v1004_v50  ;;  %v796_v13 = vmul.f32 %v755_v3, %v2199_v14  ;;  %v797_v40 = vmul.f32 %v755_v3, %v2202_v16  ;;  %v798_v10 = vmul.f32 %v755_v3, %v2205_v17  ;;  %v3327_v39 = vld [vmem:[#allocation22_spill] sm:$0xff]  ;;  %v3328_v45 = vld [vmem:[#allocation7_spill] sm:$0xff]  ;;  %v3354_v47 = vld [vmem:[#allocation69_spill] sm:$0xff] }
  0xd2   : > { %v1598_v41 = vpop.eup %1597  ;;  %1617 = vpow2.f32 %v1006_v52  ;;  %v1208_v43 = vmul.f32 %v1596_v2, %v2148_v51  ;;  %v799_v36 = vmul.f32 %v755_v3, %v2208_v37  ;;  %v800_v35 = vmul.f32 %v755_v3, %v2211_v18  ;;  %v3330_v2 = vld [vmem:[#allocation23_spill] sm:$0xff]  ;;  %v3355_v49 = vld [vmem:[#allocation70_spill] sm:$0xff] }
  0xd3   : > { %v1600_v27 = vpop.eup %1599  ;;  %1619 = vpow2.f32 %v1008_v22  ;;  %v1209_v28 = vmul.f32 %v1598_v41, %v2156_v55  ;;  %v801_v29 = vmul.f32 %v755_v3, %v2214_v19  ;;  %v802_v15 = vmul.f32 %v755_v3, %v2217_v20 }
  0xd4   : > { %v1602_v61 = vpop.eup %1601  ;;  %1621 = vpow2.f32 %v1010_v53  ;;  %v1210_v0 = vmul.f32 %v1600_v27, %v3322_v42  ;;  %1320 = vst [vmem:[%s2612_s19] sm:$0xff] %v1208_v43  ;;  %v803_v63 = vmul.f32 %v755_v3, %v3323_v31  ;;  %v804_v34 = vmul.f32 %v755_v3, %v3324_v32  ;;  %v3329_v53 = vld [vmem:[#allocation8_spill] sm:$0xff] }
  0xd5   : > { %v1604_v1 = vpop.eup %1603  ;;  %1623 = vpow2.f32 %v1012_v12  ;;  %v1211_v44 = vmul.f32 %v1602_v61, %v3325_v38  ;;  %1321 = vst [vmem:[%s2612_s19 + $0x8] sm:$0xff] %v1209_v28  ;;  %v805_v26 = vmul.f32 %v755_v3, %v3326_v25  ;;  %v806_v23 = vmul.f32 %v755_v3, %v3327_v39  ;;  %v3331_v28 = vld [vmem:[#allocation9_spill] sm:$0xff] }
  0xd6   : > { %v1606_v6 = vpop.eup %1605  ;;  %1625 = vpow2.f32 %v1014_v24  ;;  %v1212_v48 = vmul.f32 %v1604_v1, %v3328_v45  ;;  %1322 = vst [vmem:[%s2612_s19 + $0x10] sm:$0xff] %v1210_v0  ;;  %v904_v50 = vmul.f32 %v792_v62, %v2187_v9  ;;  %v905_v52 = vmul.f32 %v793_v54, %v2190_v4  ;;  %v3332_v0 = vld [vmem:[#allocation10_spill] sm:$0xff] }
  0xd7   : > { %v1608_v22 = vpop.eup %1607  ;;  %v1213_v12 = vmul.f32 %v1606_v6, %v3329_v53  ;;  %1323 = vst [vmem:[%s2612_s19 + $0x18] sm:$0xff] %v1211_v44  ;;  %v807_v41 = vmul.f32 %v755_v3, %v3330_v2  ;;  %v906_v43 = vmul.f32 %v794_v60, %v2193_v7  ;;  %v907_v27 = vmul.f32 %v795_v5, %v2196_v8  ;;  %v3333_v5 = vld [vmem:[#allocation11_spill] sm:$0xff] }
  0xd8   : > { %v1610_v24 = vpop.eup %1609  ;;  %v1214_v61 = vmul.f32 %v1608_v22, %v3331_v28  ;;  %1324 = vst [vmem:[%s2612_s19 + $0x20] sm:$0xff] %v1212_v48  ;;  %v908_v9 = vmul.f32 %v796_v13, %v2199_v14  ;;  %v909_v62 = vmul.f32 %v797_v40, %v2202_v16  ;;  %v910_v4 = vmul.f32 %v798_v10, %v2205_v17  ;;  %v3334_v40 = vld [vmem:[#allocation12_spill] sm:$0xff]  ;;  %v3336_v48 = vld [vmem:[#allocation14_spill] sm:$0xff] }
  0xd9   : > { %v1612_v54 = vpop.eup %1611  ;;  %v1215_v1 = vmul.f32 %v1610_v24, %v3332_v0  ;;  %1325 = vst [vmem:[%s2612_s19 + $0x28] sm:$0xff] %v1213_v12  ;;  %v911_v7 = vmul.f32 %v799_v36, %v2208_v37  ;;  %v912_v3 = vmul.f32 %v800_v35, %v2211_v18  ;;  %v913_v8 = vmul.f32 %v801_v29, %v2214_v19  ;;  %v3335_v19 = vld [vmem:[#allocation13_spill] sm:$0xff]  ;;  %v3337_v12 = vld [vmem:[#allocation15_spill] sm:$0xff]  ;;  %v3338_v24 = vld [vmem:[#allocation16_spill] sm:$0xff] }
  0xda   : > { %v1614_v60 = vpop.eup %1613  ;;  %v1216_v44 = vmul.f32 %v1612_v54, %v3333_v5  ;;  %1326 = vst [vmem:[%s2612_s19 + $0x30] sm:$0xff] %v1214_v61  ;;  %v914_v14 = vmul.f32 %v802_v15, %v2217_v20  ;;  %v1048_v16 = vmul.f32 1.442695, %v904_v50  ;;  %v1050_v17 = vmul.f32 1.442695, %v905_v52 }
  0xdb   : > { %v1616_v13 = vpop.eup %1615  ;;  %v1217_v10 = vmul.f32 %v1614_v60, %v3334_v40  ;;  %1327 = vst [vmem:[%s2612_s19 + $0x38] sm:$0xff] %v1215_v1  ;;  %v915_v37 = vmul.f32 %v803_v63, %v3323_v31  ;;  %v1052_v36 = vmul.f32 1.442695, %v906_v43  ;;  %v1054_v18 = vmul.f32 1.442695, %v907_v27  ;;  %v629_v63 = vpop.permute.xlu1 %628 }
  0xdc   : > { %v1618_v35 = vpop.eup %1617  ;;  %v1218_v29 = vmul.f32 %v1616_v13, %v3335_v19  ;;  %1328 = vst [vmem:[%s2612_s19 + $0x40] sm:$0xff] %v1216_v44  ;;  %v916_v6 = vmul.f32 %v804_v34, %v3324_v32  ;;  %1627 = vpow2.f32 %v1048_v16  ;;  %v1056_v20 = vmul.f32 1.442695, %v908_v9  ;;  %v3341_v13 = vld [vmem:[#allocation40_spill] sm:$0xff] }
  0xdd   : > { %v1620_v15 = vpop.eup %1619  ;;  %v1219_v50 = vmul.f32 %v1618_v35, %v3336_v48  ;;  %1329 = vst [vmem:[%s2612_s19 + $0x48] sm:$0xff] %v1217_v10  ;;  %v917_v52 = vmul.f32 %v805_v26, %v3326_v25  ;;  %1629 = vpow2.f32 %v1050_v17  ;;  %v1058_v31 = vmul.f32 1.442695, %v909_v62  ;;  %v3339_v62 = vld [vmem:[#allocation17_spill] sm:$0xff] }
  0xde   : > { %v1622_v22 = vpop.eup %1621  ;;  %v1220_v43 = vmul.f32 %v1620_v15, %v3337_v12  ;;  %1330 = vst [vmem:[%s2612_s19 + $0x50] sm:$0xff] %v1218_v29  ;;  %v918_v27 = vmul.f32 %v806_v23, %v3327_v39  ;;  %1631 = vpow2.f32 %v1052_v36  ;;  %v1060_v32 = vmul.f32 1.442695, %v910_v4  ;;  %v3340_v23 = vld [vmem:[#allocation18_spill] sm:$0xff]  ;;  %v3342_v10 = vld [vmem:[#allocation41_spill] sm:$0xff] }
  0xdf   : > { %v1624_v34 = vpop.eup %1623  ;;  %v1221_v61 = vmul.f32 %v1622_v22, %v3338_v24  ;;  %1331 = vst [vmem:[%s2612_s19 + $0x58] sm:$0xff] %v1219_v50  ;;  %v919_v25 = vmul.f32 %v807_v41, %v3330_v2  ;;  %1633 = vpow2.f32 %v1054_v18  ;;  %v1062_v26 = vmul.f32 1.442695, %v911_v7  ;;  %v3343_v18 = vld [vmem:[#allocation42_spill] sm:$0xff]  ;;  %v3349_v22 = vld [vmem:[#allocation48_spill] sm:$0xff] }
  0xe0   : > { %v1626_v9 = vpop.eup %1625  ;;  %v1222_v54 = vmul.f32 %v1624_v34, %v3339_v62  ;;  %1332 = vst [vmem:[%s2612_s19 + $0x60] sm:$0xff] %v1220_v43  ;;  %1635 = vpow2.f32 %v1056_v20  ;;  %v1064_v1 = vmul.f32 1.442695, %v912_v3  ;;  %v2660_v39 = vsub.f32 0.0, %v629_v63  ;;  %v3347_v15 = vld [vmem:[#allocation46_spill] sm:$0xff] }
  0xe1   : > { %v1223_v4 = vmul.f32 %v1626_v9, %v3340_v23  ;;  %1333 = vst [vmem:[%s2612_s19 + $0x68] sm:$0xff] %v1221_v61  ;;  %1637 = vpow2.f32 %v1058_v31  ;;  %v1066_v60 = vmul.f32 1.442695, %v913_v8  ;;  %v1068_v44 = vmul.f32 1.442695, %v914_v14  ;;  %v3344_v14 = vld [vmem:[#allocation43_spill] sm:$0xff] }
  0xe2   : > { %1334 = vst [vmem:[%s2612_s19 + $0x70] sm:$0xff] %v1222_v54  ;;  %1639 = vpow2.f32 %v1060_v32  ;;  %v1070_v2 = vmul.f32 1.442695, %v915_v37  ;;  %v1072_v41 = vmul.f32 1.442695, %v916_v6  ;;  %v776_v3 = vmul.f32 %v2596_v58, %v3341_v13  ;;  %v3345_v37 = vld [vmem:[#allocation44_spill] sm:$0xff] }
  0xe3   : > { %v1074_v7 = vmul.f32 1.442695, %v917_v52  ;;  %1335 = vst [vmem:[%s2612_s19 + $0x78] sm:$0xff] %v1223_v4  ;;  %1641 = vpow2.f32 %v1062_v26  ;;  %v1076_v16 = vmul.f32 1.442695, %v918_v27  ;;  %v777_v36 = vmul.f32 %v2596_v58, %v3342_v10  ;;  %v3346_v6 = vld [vmem:[#allocation45_spill] sm:$0xff] }
  0xe4   : > { %v1078_v17 = vmul.f32 1.442695, %v919_v25  ;;  %1643 = vpow2.f32 %v1064_v1  ;;  %v778_v8 = vmul.f32 %v2596_v58, %v3343_v18  ;;  %v779_v35 = vmul.f32 %v2596_v58, %v3344_v14  ;;  %v3348_v31 = vld [vmem:[#allocation47_spill] sm:$0xff]  ;;  %v3350_v27 = vld [vmem:[#allocation65_spill] sm:$0xff]  ;;  %v3351_v25 = vld [vmem:[#allocation66_spill] sm:$0xff] }
  0xe5   : > { %1645 = vpow2.f32 %v1066_v60  ;;  %v780_v29 = vmul.f32 %v2596_v58, %v3345_v37  ;;  %v781_v20 = vmul.f32 %v2596_v58, %v3346_v6  ;;  %v782_v50 = vmul.f32 %v2596_v58, %v3347_v15  ;;  %v3352_v9 = vld [vmem:[#allocation67_spill] sm:$0xff]  ;;  %v3353_v60 = vld [vmem:[#allocation68_spill] sm:$0xff] }
  0xe6   : > { %v1628_v52 = vpop.eup %1627  ;;  %1647 = vpow2.f32 %v1068_v44  ;;  %v783_v63 = vmul.f32 %v2596_v58, %v3348_v31  ;;  %v784_v43 = vmul.f32 %v2596_v58, %v3349_v22  ;;  %v785_v32 = vmul.f32 %v2596_v58, %v3350_v27 }
  0xe7   : > { %v1630_v34 = vpop.eup %1629  ;;  %1649 = vpow2.f32 %v1070_v2  ;;  %v1240_v61 = vmul.f32 %v1628_v52, %v2148_v51  ;;  %v786_v26 = vmul.f32 %v2596_v58, %v3351_v25  ;;  %v787_v54 = vmul.f32 %v2596_v58, %v3352_v9 }
  0xe8   : > { %v1632_v1 = vpop.eup %1631  ;;  %1651 = vpow2.f32 %v1072_v41  ;;  %v1241_v4 = vmul.f32 %v1630_v34, %v2156_v55  ;;  %v788_v44 = vmul.f32 %v2596_v58, %v3353_v60  ;;  %v789_v46 = vmul.f32 %v2596_v58, %v3354_v47 }
  0xe9   : > { %v1634_v2 = vpop.eup %1633  ;;  %1653 = vpow2.f32 %v1074_v7  ;;  %v1242_v52 = vmul.f32 %v1632_v1, %v3322_v42  ;;  %1352 = vst [vmem:[%s2612_s19 + $0x100] sm:$0xff] %v1240_v61  ;;  %v790_v11 = vmul.f32 %v2596_v58, %v3355_v49  ;;  %v888_v41 = vmul.f32 %v776_v3, %v3341_v13  ;;  %v3356_v1 = vld [vmem:[#allocation71_spill] sm:$0xff] }
  0xea   : > { %v1636_v56 = vpop.eup %1635  ;;  %1655 = vpow2.f32 %v1076_v16  ;;  %v1243_v34 = vmul.f32 %v1634_v2, %v3325_v38  ;;  %1353 = vst [vmem:[%s2612_s19 + $0x108] sm:$0xff] %v1241_v4  ;;  %v889_v59 = vmul.f32 %v777_v36, %v3342_v10  ;;  %v890_v57 = vmul.f32 %v778_v8, %v3343_v18 }
  0xeb   : > { %v1638_v7 = vpop.eup %1637  ;;  %1657 = vpow2.f32 %v1078_v17  ;;  %v1244_v61 = vmul.f32 %v1636_v56, %v3328_v45  ;;  %1354 = vst [vmem:[%s2612_s19 + $0x110] sm:$0xff] %v1242_v52  ;;  %v791_v33 = vmul.f32 %v2596_v58, %v3356_v1  ;;  %v891_v13 = vmul.f32 %v779_v35, %v3344_v14 }
  0xec   : > { %v1640_v16 = vpop.eup %1639  ;;  %v1245_v3 = vmul.f32 %v1638_v7, %v3329_v53  ;;  %1355 = vst [vmem:[%s2612_s19 + $0x118] sm:$0xff] %v1243_v34  ;;  %v892_v10 = vmul.f32 %v780_v29, %v3345_v37  ;;  %v893_v36 = vmul.f32 %v781_v20, %v3346_v6  ;;  %v894_v17 = vmul.f32 %v782_v50, %v3347_v15 }
  0xed   : > { %v1642_v18 = vpop.eup %1641  ;;  %v1246_v56 = vmul.f32 %v1640_v16, %v3331_v28  ;;  %1356 = vst [vmem:[%s2612_s19 + $0x120] sm:$0xff] %v1244_v61  ;;  %v895_v58 = vmul.f32 %v783_v63, %v3348_v31  ;;  %v896_v8 = vmul.f32 %v784_v43, %v3349_v22  ;;  %v897_v14 = vmul.f32 %v785_v32, %v3350_v27 }
  0xee   : > { %v1644_v35 = vpop.eup %1643  ;;  %v1247_v4 = vmul.f32 %v1642_v18, %v3332_v0  ;;  %1357 = vst [vmem:[%s2612_s19 + $0x128] sm:$0xff] %v1245_v3  ;;  %v1016_v37 = vmul.f32 1.442695, %v888_v41  ;;  %v1018_v29 = vmul.f32 1.442695, %v889_v59  ;;  %v898_v50 = vmul.f32 %v786_v26, %v3351_v25 }
  0xef   : > { %v1020_v6 = vmul.f32 1.442695, %v890_v57  ;;  %v1646_v20 = vpop.eup %1645  ;;  %v1248_v15 = vmul.f32 %v1644_v35, %v3333_v5  ;;  %1358 = vst [vmem:[%s2612_s19 + $0x130] sm:$0xff] %v1246_v56  ;;  %v899_v31 = vmul.f32 %v787_v54, %v3352_v9  ;;  %v1022_v63 = vmul.f32 1.442695, %v891_v13  ;;  %v3358_v56 = vld [vmem:[#allocation73_spill] sm:$0xff] }
  0xf0   : > { %v1648_v22 = vpop.eup %1647  ;;  %v1249_v43 = vmul.f32 %v1646_v20, %v3334_v40  ;;  %1359 = vst [vmem:[%s2612_s19 + $0x138] sm:$0xff] %v1247_v4  ;;  %v900_v27 = vmul.f32 %v788_v44, %v3353_v60  ;;  %1659 = vpow2.f32 %v1016_v37  ;;  %v1024_v59 = vmul.f32 1.442695, %v892_v10  ;;  %v3360_v35 = vld [vmem:[#allocation75_spill] sm:$0xff]  ;;  %v3361_v37 = vld [vmem:[#allocation76_spill] sm:$0xff] }
  0xf1   : > { %v1650_v57 = vpop.eup %1649  ;;  %v1250_v32 = vmul.f32 %v1648_v22, %v3335_v19  ;;  %1360 = vst [vmem:[%s2612_s19 + $0x140] sm:$0xff] %v1248_v15  ;;  %v901_v2 = vmul.f32 %v789_v46, %v3354_v47  ;;  %1661 = vpow2.f32 %v1018_v29  ;;  %v1026_v25 = vmul.f32 1.442695, %v893_v36  ;;  %v3363_v15 = vld [vmem:[#allocation78_spill] sm:$0xff] }
  0xf2   : > { %v1652_v26 = vpop.eup %1651  ;;  %v1251_v9 = vmul.f32 %v1650_v57, %v3336_v48  ;;  %1361 = vst [vmem:[%s2612_s19 + $0x148] sm:$0xff] %v1249_v43  ;;  %v902_v54 = vmul.f32 %v790_v11, %v3355_v49  ;;  %1663 = vpow2.f32 %v1020_v6  ;;  %v1028_v60 = vmul.f32 1.442695, %v894_v17  ;;  %v3357_v17 = vld [vmem:[#allocation72_spill] sm:$0xff]  ;;  %v3362_v6 = vld [vmem:[#allocation77_spill] sm:$0xff] }
  0xf3   : > { %v1654_v44 = vpop.eup %1653  ;;  %v1252_v52 = vmul.f32 %v1652_v26, %v3337_v12  ;;  %1362 = vst [vmem:[%s2612_s19 + $0x150] sm:$0xff] %v1250_v32  ;;  %v903_v41 = vmul.f32 %v791_v33, %v3356_v1  ;;  %1665 = vpow2.f32 %v1022_v63  ;;  %v1030_v46 = vmul.f32 1.442695, %v895_v58  ;;  %v3364_v63 = vld [vmem:[#allocation79_spill] sm:$0xff]  ;;  %v3365_v43 = vld [vmem:[#allocation80_spill] sm:$0xff] }
  0xf4   : > { %v1656_v47 = vpop.eup %1655  ;;  %v1253_v34 = vmul.f32 %v1654_v44, %v3338_v24  ;;  %1363 = vst [vmem:[%s2612_s19 + $0x158] sm:$0xff] %v1251_v9  ;;  %1667 = vpow2.f32 %v1024_v59  ;;  %v1032_v7 = vmul.f32 1.442695, %v896_v8  ;;  %v1034_v11 = vmul.f32 1.442695, %v897_v14  ;;  %v3359_v8 = vld [vmem:[#allocation74_spill] sm:$0xff] }
  0xf5   : > { %v1658_v49 = vpop.eup %1657  ;;  %v1254_v61 = vmul.f32 %v1656_v47, %v3339_v62  ;;  %1364 = vst [vmem:[%s2612_s19 + $0x160] sm:$0xff] %v1252_v52  ;;  %1669 = vpow2.f32 %v1026_v25  ;;  %v1036_v13 = vmul.f32 1.442695, %v898_v50  ;;  %v1038_v16 = vmul.f32 1.442695, %v899_v31  ;;  %v3366_v59 = vld [vmem:[#allocation88_spill] sm:$0xff] }
  0xf6   : > { %v1255_v33 = vmul.f32 %v1658_v49, %v3340_v23  ;;  %1365 = vst [vmem:[%s2612_s19 + $0x168] sm:$0xff] %v1253_v34  ;;  %1671 = vpow2.f32 %v1028_v60  ;;  %v1040_v1 = vmul.f32 1.442695, %v900_v27  ;;  %v1042_v3 = vmul.f32 1.442695, %v901_v2  ;;  %v3367_v25 = vld [vmem:[#allocation89_spill] sm:$0xff] }
  0xf7   : > { %1366 = vst [vmem:[%s2612_s19 + $0x170] sm:$0xff] %v1254_v61  ;;  %1673 = vpow2.f32 %v1030_v46  ;;  %v1044_v10 = vmul.f32 1.442695, %v902_v54  ;;  %v1046_v36 = vmul.f32 1.442695, %v903_v41  ;;  %v824_v18 = vmul.f32 %v2660_v39, %v3357_v17  ;;  %v3368_v9 = vld [vmem:[#allocation90_spill] sm:$0xff] }
  0xf8   : > { %1367 = vst [vmem:[%s2612_s19 + $0x178] sm:$0xff] %v1255_v33  ;;  %1675 = vpow2.f32 %v1032_v7  ;;  %v825_v58 = vmul.f32 %v2660_v39, %v3358_v56  ;;  %v826_v14 = vmul.f32 %v2660_v39, %v3359_v8  ;;  %v827_v4 = vmul.f32 %v2660_v39, %v3360_v35  ;;  %v3369_v52 = vld [vmem:[#allocation91_spill] sm:$0xff]  ;;  %v3370_v46 = vld [vmem:[#allocation92_spill] sm:$0xff] }
  0xf9   : > { %1677 = vpow2.f32 %v1034_v11  ;;  %v828_v29 = vmul.f32 %v2660_v39, %v3361_v37  ;;  %v829_v20 = vmul.f32 %v2660_v39, %v3362_v6  ;;  %v830_v50 = vmul.f32 %v2660_v39, %v3363_v15  ;;  %v3371_v11 = vld [vmem:[#allocation93_spill] sm:$0xff] }
  0xfa   : > { %v1660_v31 = vpop.eup %1659  ;;  %1679 = vpow2.f32 %v1036_v13  ;;  %v831_v22 = vmul.f32 %v2660_v39, %v3364_v63  ;;  %v832_v27 = vmul.f32 %v2660_v39, %v3365_v43  ;;  %v833_v57 = vmul.f32 %v2660_v39, %v3366_v59 }
  0xfb   : > { %v1662_v32 = vpop.eup %1661  ;;  %1681 = vpow2.f32 %v1038_v16  ;;  %v1224_v2 = vmul.f32 %v1660_v31, %v2148_v51  ;;  %v834_v26 = vmul.f32 %v2660_v39, %v3367_v25  ;;  %v835_v54 = vmul.f32 %v2660_v39, %v3368_v9 }
  0xfc   : > { %v1664_v60 = vpop.eup %1663  ;;  %1683 = vpow2.f32 %v1040_v1  ;;  %v1225_v44 = vmul.f32 %v1662_v32, %v2156_v55  ;;  %v836_v41 = vmul.f32 %v2660_v39, %v3369_v52  ;;  %v837_v47 = vmul.f32 %v2660_v39, %v3370_v46 }
  0xfd   : > { %v1666_v34 = vpop.eup %1665  ;;  %1685 = vpow2.f32 %v1042_v3  ;;  %v1226_v7 = vmul.f32 %v1664_v60, %v3322_v42  ;;  %1336 = vst [vmem:[%s2612_s19 + $0x80] sm:$0xff] %v1224_v2  ;;  %v838_v49 = vmul.f32 %v2660_v39, %v3371_v11  ;;  %v936_v61 = vmul.f32 %v824_v18, %v3357_v17 }
  0xfe   : > { %v1668_v13 = vpop.eup %1667  ;;  %1687 = vpow2.f32 %v1044_v10  ;;  %v1227_v16 = vmul.f32 %v1666_v34, %v3325_v38  ;;  %1337 = vst [vmem:[%s2612_s19 + $0x88] sm:$0xff] %v1225_v44  ;;  %v937_v33 = vmul.f32 %v825_v58, %v3358_v56  ;;  %v938_v1 = vmul.f32 %v826_v14, %v3359_v8 }
  0xff   : > { %v1670_v3 = vpop.eup %1669  ;;  %1689 = vpow2.f32 %v1046_v36  ;;  %v1228_v31 = vmul.f32 %v1668_v13, %v3328_v45  ;;  %1338 = vst [vmem:[%s2612_s19 + $0x90] sm:$0xff] %v1226_v7  ;;  %v839_v32 = vmul.f32 %v2660_v39, %v2589_v21  ;;  %v939_v17 = vmul.f32 %v827_v4, %v3360_v35 }
 0x100   : > { %v1672_v10 = vpop.eup %1671  ;;  %v1229_v18 = vmul.f32 %v1670_v3, %v3329_v53  ;;  %1339 = vst [vmem:[%s2612_s19 + $0x98] sm:$0xff] %v1227_v16  ;;  %v940_v56 = vmul.f32 %v828_v29, %v3361_v37  ;;  %v941_v58 = vmul.f32 %v829_v20, %v3362_v6  ;;  %v942_v36 = vmul.f32 %v830_v50, %v3363_v15 }
 0x101   : > { %v1674_v8 = vpop.eup %1673  ;;  %v1230_v14 = vmul.f32 %v1672_v10, %v3331_v28  ;;  %1340 = vst [vmem:[%s2612_s19 + $0xa0] sm:$0xff] %v1228_v31  ;;  %v943_v39 = vmul.f32 %v831_v22, %v3364_v63  ;;  %v944_v2 = vmul.f32 %v832_v27, %v3365_v43  ;;  %v945_v35 = vmul.f32 %v833_v57, %v3366_v59 }
 0x102   : > { %v1676_v4 = vpop.eup %1675  ;;  %v1231_v60 = vmul.f32 %v1674_v8, %v3332_v0  ;;  %1341 = vst [vmem:[%s2612_s19 + $0xa8] sm:$0xff] %v1229_v18  ;;  %v1112_v37 = vmul.f32 1.442695, %v936_v61  ;;  %v1114_v29 = vmul.f32 1.442695, %v937_v33  ;;  %v946_v50 = vmul.f32 %v834_v26, %v3367_v25  ;;  %v624_v26 = vpop.permute.xlu0 %623 }
 0x103   : > { %v1116_v6 = vmul.f32 1.442695, %v938_v1  ;;  %v1678_v20 = vpop.eup %1677  ;;  %v1232_v15 = vmul.f32 %v1676_v4, %v3333_v5  ;;  %1342 = vst [vmem:[%s2612_s19 + $0xb0] sm:$0xff] %v1230_v14  ;;  %v947_v63 = vmul.f32 %v835_v54, %v3368_v9  ;;  %v1118_v22 = vmul.f32 1.442695, %v939_v17  ;;  %v3373_v14 = vld [vmem:[#allocation25_spill] sm:$0xff] }
 0x104   : > { %v1680_v43 = vpop.eup %1679  ;;  %v1233_v27 = vmul.f32 %v1678_v20, %v3334_v40  ;;  %1343 = vst [vmem:[%s2612_s19 + $0xb8] sm:$0xff] %v1231_v60  ;;  %v948_v59 = vmul.f32 %v836_v41, %v3369_v52  ;;  %1691 = vpow2.f32 %v1112_v37  ;;  %v1120_v57 = vmul.f32 1.442695, %v940_v56  ;;  %v3375_v4 = vld [vmem:[#allocation27_spill] sm:$0xff]  ;;  %v3376_v37 = vld [vmem:[#allocation28_spill] sm:$0xff] }
 0x105   : > { %v1682_v44 = vpop.eup %1681  ;;  %v1234_v34 = vmul.f32 %v1680_v43, %v3335_v19  ;;  %1344 = vst [vmem:[%s2612_s19 + $0xc0] sm:$0xff] %v1232_v15  ;;  %v949_v7 = vmul.f32 %v837_v47, %v3370_v46  ;;  %1693 = vpow2.f32 %v1114_v29  ;;  %v1122_v25 = vmul.f32 1.442695, %v941_v58 }
 0x106   : > { %v1684_v9 = vpop.eup %1683  ;;  %v1235_v54 = vmul.f32 %v1682_v44, %v3336_v48  ;;  %1345 = vst [vmem:[%s2612_s19 + $0xc8] sm:$0xff] %v1233_v27  ;;  %v950_v61 = vmul.f32 %v838_v49, %v3371_v11  ;;  %1695 = vpow2.f32 %v1116_v6  ;;  %v1124_v52 = vmul.f32 1.442695, %v942_v36  ;;  %v3372_v36 = vld [vmem:[#allocation24_spill] sm:$0xff]  ;;  %v3377_v6 = vld [vmem:[#allocation29_spill] sm:$0xff] }
 0x107   : > { %v1686_v41 = vpop.eup %1685  ;;  %v1236_v13 = vmul.f32 %v1684_v9, %v3337_v12  ;;  %1346 = vst [vmem:[%s2612_s19 + $0xd0] sm:$0xff] %v1234_v34  ;;  %v951_v16 = vmul.f32 %v839_v32, %v2589_v21  ;;  %1697 = vpow2.f32 %v1118_v22  ;;  %v1126_v46 = vmul.f32 1.442695, %v943_v39  ;;  %v3379_v22 = vld [vmem:[#allocation31_spill] sm:$0xff]  ;;  %v3380_v27 = vld [vmem:[#allocation32_spill] sm:$0xff]  ;;  %v3381_v34 = vld [vmem:[#allocation33_spill] sm:$0xff] }
 0x108   : > { %v1688_v47 = vpop.eup %1687  ;;  %v1237_v33 = vmul.f32 %v1686_v41, %v3338_v24  ;;  %1347 = vst [vmem:[%s2612_s19 + $0xd8] sm:$0xff] %v1235_v54  ;;  %1699 = vpow2.f32 %v1120_v57  ;;  %v1128_v1 = vmul.f32 1.442695, %v944_v2  ;;  %v756_v11 = vsub.f32 0.0, %v624_v26  ;;  %v3374_v2 = vld [vmem:[#allocation26_spill] sm:$0xff]  ;;  %v3384_v41 = vld [vmem:[#allocation36_spill] sm:$0xff] }
 0x109   : > { %v1690_v49 = vpop.eup %1689  ;;  %v1238_v3 = vmul.f32 %v1688_v47, %v3339_v62  ;;  %1348 = vst [vmem:[%s2612_s19 + $0xe0] sm:$0xff] %v1236_v13  ;;  %1701 = vpow2.f32 %v1122_v25  ;;  %v1130_v31 = vmul.f32 1.442695, %v945_v35  ;;  %v1132_v17 = vmul.f32 1.442695, %v946_v50  ;;  %v3378_v50 = vld [vmem:[#allocation30_spill] sm:$0xff] }
 0x10a   : > { %v1239_v21 = vmul.f32 %v1690_v49, %v3340_v23  ;;  %1349 = vst [vmem:[%s2612_s19 + $0xe8] sm:$0xff] %v1237_v33  ;;  %1703 = vpow2.f32 %v1124_v52  ;;  %v1134_v32 = vmul.f32 1.442695, %v947_v63  ;;  %v1136_v10 = vmul.f32 1.442695, %v948_v59  ;;  %v3382_v25 = vld [vmem:[#allocation34_spill] sm:$0xff] }
 0x10b   : > { %1350 = vst [vmem:[%s2612_s19 + $0xf0] sm:$0xff] %v1238_v3  ;;  %1705 = vpow2.f32 %v1126_v46  ;;  %v1138_v18 = vmul.f32 1.442695, %v949_v7  ;;  %v1140_v56 = vmul.f32 1.442695, %v950_v61  ;;  %v808_v8 = vmul.f32 %v756_v11, %v3372_v36  ;;  %v3383_v61 = vld [vmem:[#allocation35_spill] sm:$0xff] }
 0x10c   : > { %v1142_v58 = vmul.f32 1.442695, %v951_v16  ;;  %1351 = vst [vmem:[%s2612_s19 + $0xf8] sm:$0xff] %v1239_v21  ;;  %1707 = vpow2.f32 %v1128_v1  ;;  %v809_v39 = vmul.f32 %v756_v11, %v3373_v14  ;;  %v810_v35 = vmul.f32 %v756_v11, %v3374_v2  ;;  %v3385_v47 = vld [vmem:[#allocation37_spill] sm:$0xff] }
 0x10d   : > { %1709 = vpow2.f32 %v1130_v31  ;;  %v811_v60 = vmul.f32 %v756_v11, %v3375_v4  ;;  %v812_v29 = vmul.f32 %v756_v11, %v3376_v37  ;;  %v813_v20 = vmul.f32 %v756_v11, %v3377_v6 }
 0x10e   : > { %v1692_v15 = vpop.eup %1691  ;;  %1711 = vpow2.f32 %v1132_v17  ;;  %v814_v63 = vmul.f32 %v756_v11, %v3378_v50  ;;  %v815_v43 = vmul.f32 %v756_v11, %v3379_v22  ;;  %v816_v59 = vmul.f32 %v756_v11, %v3380_v27 }
 0x10f   : > { %v1694_v57 = vpop.eup %1693  ;;  %1713 = vpow2.f32 %v1134_v32  ;;  %v1272_v44 = vmul.f32 %v1692_v15, %v2148_v51  ;;  %v817_v7 = vmul.f32 %v756_v11, %v3381_v34  ;;  %v818_v26 = vmul.f32 %v756_v11, %v3382_v25  ;;  %v3387_v15 = vld [vmem:[#allocation39_spill] sm:$0xff] }
 0x110   : > { %v1696_v9 = vpop.eup %1695  ;;  %1715 = vpow2.f32 %v1136_v10  ;;  %v1273_v54 = vmul.f32 %v1694_v57, %v2156_v55  ;;  %v819_v52 = vmul.f32 %v756_v11, %v3383_v61  ;;  %v820_v13 = vmul.f32 %v756_v11, %v3384_v41  ;;  %v3386_v10 = vld [vmem:[#allocation38_spill] sm:$0xff] }
 0x111   : > { %v1698_v16 = vpop.eup %1697  ;;  %1717 = vpow2.f32 %v1138_v18  ;;  %v1274_v46 = vmul.f32 %v1696_v9, %v3322_v42  ;;  %1384 = vst [vmem:[%s2612_s19 + $0x200] sm:$0xff] %v1272_v44  ;;  %v821_v33 = vmul.f32 %v756_v11, %v3385_v47  ;;  %v920_v1 = vmul.f32 %v808_v8, %v3372_v36 }
 0x112   : > { %v1700_v49 = vpop.eup %1699  ;;  %1719 = vpow2.f32 %v1140_v56  ;;  %v1275_v3 = vmul.f32 %v1698_v16, %v3325_v38  ;;  %1385 = vst [vmem:[%s2612_s19 + $0x208] sm:$0xff] %v1273_v54  ;;  %v921_v31 = vmul.f32 %v809_v39, %v3373_v14  ;;  %v922_v17 = vmul.f32 %v810_v35, %v3374_v2 }
 0x113   : > { %v1702_v21 = vpop.eup %1701  ;;  %1721 = vpow2.f32 %v1142_v58  ;;  %v1276_v32 = vmul.f32 %v1700_v49, %v3328_v45  ;;  %1386 = vst [vmem:[%s2612_s19 + $0x210] sm:$0xff] %v1274_v46  ;;  %v822_v18 = vmul.f32 %v756_v11, %v3386_v10  ;;  %v923_v36 = vmul.f32 %v811_v60, %v3375_v4 }
 0x114   : > { %v1704_v8 = vpop.eup %1703  ;;  %v1277_v56 = vmul.f32 %v1702_v21, %v3329_v53  ;;  %1387 = vst [vmem:[%s2612_s19 + $0x218] sm:$0xff] %v1275_v3  ;;  %v823_v57 = vmul.f32 %v756_v11, %v3387_v15  ;;  %v924_v14 = vmul.f32 %v812_v29, %v3376_v37  ;;  %v925_v39 = vmul.f32 %v813_v20, %v3377_v6 }
 0x115   : > { %v1706_v58 = vpop.eup %1705  ;;  %v1278_v2 = vmul.f32 %v1704_v8, %v3331_v28  ;;  %1388 = vst [vmem:[%s2612_s19 + $0x220] sm:$0xff] %v1276_v32  ;;  %v926_v35 = vmul.f32 %v814_v63, %v3378_v50  ;;  %v927_v44 = vmul.f32 %v815_v43, %v3379_v22  ;;  %v928_v4 = vmul.f32 %v816_v59, %v3380_v27 }
 0x116   : > { %v1708_v60 = vpop.eup %1707  ;;  %v1279_v9 = vmul.f32 %v1706_v58, %v3332_v0  ;;  %1389 = vst [vmem:[%s2612_s19 + $0x228] sm:$0xff] %v1277_v56  ;;  %v1080_v11 = vmul.f32 1.442695, %v920_v1  ;;  %v1082_v37 = vmul.f32 1.442695, %v921_v31  ;;  %v929_v54 = vmul.f32 %v817_v7, %v3381_v34  ;;  %v3388_v58 = vld [vmem:[#allocation81_spill] sm:$0xff] }
 0x117   : > { %v1084_v29 = vmul.f32 1.442695, %v922_v17  ;;  %v1710_v6 = vpop.eup %1709  ;;  %v1280_v20 = vmul.f32 %v1708_v60, %v3333_v5  ;;  %1390 = vst [vmem:[%s2612_s19 + $0x230] sm:$0xff] %v1278_v2  ;;  %v930_v50 = vmul.f32 %v818_v26, %v3382_v25  ;;  %v1086_v63 = vmul.f32 1.442695, %v923_v36 }
 0x118   : > { %v1712_v22 = vpop.eup %1711  ;;  %v1281_v43 = vmul.f32 %v1710_v6, %v3334_v40  ;;  %1391 = vst [vmem:[%s2612_s19 + $0x238] sm:$0xff] %v1279_v9  ;;  %v931_v27 = vmul.f32 %v819_v52, %v3383_v61  ;;  %1723 = vpow2.f32 %v1080_v11  ;;  %v1088_v59 = vmul.f32 1.442695, %v924_v14  ;;  %v639_v52 = vpop.permute.xlu1 %638  ;;  %v3391_v11 = vld [vmem:[#allocation84_spill] sm:$0xff] }
 0x119   : > { %v1714_v16 = vpop.eup %1713  ;;  %v1282_v46 = vmul.f32 %v1712_v22, %v3335_v19  ;;  %1392 = vst [vmem:[%s2612_s19 + $0x240] sm:$0xff] %v1280_v20  ;;  %v932_v1 = vmul.f32 %v820_v13, %v3384_v41  ;;  %1725 = vpow2.f32 %v1082_v37  ;;  %v1090_v34 = vmul.f32 1.442695, %v925_v39  ;;  %v3393_v20 = vld [vmem:[#allocation86_spill] sm:$0xff]  ;;  %v3394_v22 = vld [vmem:[#allocation87_spill] sm:$0xff] }
 0x11a   : > { %v1716_v7 = vpop.eup %1715  ;;  %v1283_v25 = vmul.f32 %v1714_v16, %v3336_v48  ;;  %1393 = vst [vmem:[%s2612_s19 + $0x248] sm:$0xff] %v1281_v43  ;;  %v933_v26 = vmul.f32 %v821_v33, %v3385_v47  ;;  %1727 = vpow2.f32 %v1084_v29  ;;  %v1092_v61 = vmul.f32 1.442695, %v926_v35  ;;  %v3389_v35 = vld [vmem:[#allocation82_spill] sm:$0xff]  ;;  %v3392_v29 = vld [vmem:[#allocation85_spill] sm:$0xff] }
 0x11b   : > { %v1718_v49 = vpop.eup %1717  ;;  %v1284_v3 = vmul.f32 %v1716_v7, %v3337_v12  ;;  %1394 = vst [vmem:[%s2612_s19 + $0x250] sm:$0xff] %v1282_v46  ;;  %v934_v31 = vmul.f32 %v822_v18, %v3386_v10  ;;  %1729 = vpow2.f32 %v1086_v63  ;;  %v1094_v41 = vmul.f32 1.442695, %v927_v44  ;;  %v3395_v46 = vld [vmem:[#allocation94_spill] sm:$0xff] }
 0x11c   : > { %v1720_v13 = vpop.eup %1719  ;;  %v1285_v17 = vmul.f32 %v1718_v49, %v3338_v24  ;;  %1395 = vst [vmem:[%s2612_s19 + $0x258] sm:$0xff] %v1283_v25  ;;  %v935_v47 = vmul.f32 %v823_v57, %v3387_v15  ;;  %1731 = vpow2.f32 %v1088_v59  ;;  %v1096_v33 = vmul.f32 1.442695, %v928_v4  ;;  %v3390_v4 = vld [vmem:[#allocation83_spill] sm:$0xff]  ;;  %v3398_v49 = vld [vmem:[#allocation97_spill] sm:$0xff] }
 0x11d   : > { %v1722_v21 = vpop.eup %1721  ;;  %v1286_v32 = vmul.f32 %v1720_v13, %v3339_v62  ;;  %1396 = vst [vmem:[%s2612_s19 + $0x260] sm:$0xff] %v1284_v3  ;;  %1733 = vpow2.f32 %v1090_v34  ;;  %v1098_v36 = vmul.f32 1.442695, %v929_v54  ;;  %v759_v10 = vsub.f32 0.0, %v639_v52  ;;  %v3396_v34 = vld [vmem:[#allocation95_spill] sm:$0xff]  ;;  %v3399_v13 = vld [vmem:[#allocation98_spill] sm:$0xff] }
 0x11e   : > { %v1287_v18 = vmul.f32 %v1722_v21, %v3340_v23  ;;  %1397 = vst [vmem:[%s2612_s19 + $0x268] sm:$0xff] %v1285_v17  ;;  %1735 = vpow2.f32 %v1092_v61  ;;  %v1100_v8 = vmul.f32 1.442695, %v930_v50  ;;  %v1102_v56 = vmul.f32 1.442695, %v931_v27  ;;  %v3397_v61 = vld [vmem:[#allocation96_spill] sm:$0xff] }
 0x11f   : > { %1398 = vst [vmem:[%s2612_s19 + $0x270] sm:$0xff] %v1286_v32  ;;  %1737 = vpow2.f32 %v1094_v41  ;;  %v1104_v14 = vmul.f32 1.442695, %v932_v1  ;;  %v1106_v15 = vmul.f32 1.442695, %v933_v26  ;;  %v856_v2 = vmul.f32 %v759_v10, %v3388_v58 }
 0x120   : > { %1399 = vst [vmem:[%s2612_s19 + $0x278] sm:$0xff] %v1287_v18  ;;  %1739 = vpow2.f32 %v1096_v33  ;;  %v1108_v57 = vmul.f32 1.442695, %v934_v31  ;;  %v1110_v39 = vmul.f32 1.442695, %v935_v47  ;;  %v857_v44 = vmul.f32 %v759_v10, %v3389_v35  ;;  %v3400_v47 = vld [vmem:[#allocation99_spill] sm:$0xff] }
 0x121   : > { %1741 = vpow2.f32 %v1098_v36  ;;  %v858_v60 = vmul.f32 %v759_v10, %v3390_v4  ;;  %v859_v37 = vmul.f32 %v759_v10, %v3391_v11  ;;  %v860_v6 = vmul.f32 %v759_v10, %v3392_v29 }
 0x122   : > { %v1724_v9 = vpop.eup %1723  ;;  %1743 = vpow2.f32 %v1100_v8  ;;  %v861_v54 = vmul.f32 %v759_v10, %v3393_v20  ;;  %v862_v43 = vmul.f32 %v759_v10, %v3394_v22  ;;  %v863_v27 = vmul.f32 %v759_v10, %v2546_v30 }
 0x123   : > { %v1726_v50 = vpop.eup %1725  ;;  %1745 = vpow2.f32 %v1102_v56  ;;  %v1256_v63 = vmul.f32 %v1724_v9, %v2148_v51  ;;  %v864_v1 = vmul.f32 %v759_v10, %v3395_v46  ;;  %v865_v7 = vmul.f32 %v759_v10, %v3396_v34 }
 0x124   : > { %v1728_v59 = vpop.eup %1727  ;;  %1747 = vpow2.f32 %v1104_v14  ;;  %v1257_v16 = vmul.f32 %v1726_v50, %v2156_v55  ;;  %v866_v52 = vmul.f32 %v759_v10, %v3397_v61  ;;  %v867_v3 = vmul.f32 %v759_v10, %v3398_v49  ;;  %v3401_v14 = vld [vmem:[#allocation100_spill] sm:$0xff] }
 0x125   : > { %v1730_v25 = vpop.eup %1729  ;;  %1749 = vpow2.f32 %v1106_v15  ;;  %v1258_v26 = vmul.f32 %v1728_v59, %v3322_v42  ;;  %1368 = vst [vmem:[%s2612_s19 + $0x180] sm:$0xff] %v1256_v63  ;;  %v868_v17 = vmul.f32 %v759_v10, %v3399_v13  ;;  %v869_v33 = vmul.f32 %v759_v10, %v3400_v47  ;;  %v3402_v63 = vld [vmem:[#allocation101_spill] sm:$0xff] }
 0x126   : > { %v1732_v31 = vpop.eup %1731  ;;  %1751 = vpow2.f32 %v1108_v57  ;;  %v1259_v41 = vmul.f32 %v1730_v25, %v3325_v38  ;;  %1369 = vst [vmem:[%s2612_s19 + $0x188] sm:$0xff] %v1257_v16  ;;  %v968_v36 = vmul.f32 %v856_v2, %v3388_v58  ;;  %v969_v18 = vmul.f32 %v857_v44, %v3389_v35 }
 0x127   : > { %v1734_v21 = vpop.eup %1733  ;;  %1753 = vpow2.f32 %v1110_v39  ;;  %v1260_v32 = vmul.f32 %v1732_v31, %v3328_v45  ;;  %1370 = vst [vmem:[%s2612_s19 + $0x190] sm:$0xff] %v1258_v26  ;;  %v870_v15 = vmul.f32 %v759_v10, %v3401_v14  ;;  %v970_v57 = vmul.f32 %v858_v60, %v3390_v4 }
 0x128   : > { %v1736_v8 = vpop.eup %1735  ;;  %v1261_v56 = vmul.f32 %v1734_v21, %v3329_v53  ;;  %1371 = vst [vmem:[%s2612_s19 + $0x198] sm:$0xff] %v1259_v41  ;;  %v971_v9 = vmul.f32 %v859_v37, %v3391_v11  ;;  %v871_v58 = vmul.f32 %v759_v10, %v3402_v63  ;;  %v972_v2 = vmul.f32 %v860_v6, %v3392_v29 }
 0x129   : > { %v1738_v39 = vpop.eup %1737  ;;  %v1262_v50 = vmul.f32 %v1736_v8, %v3331_v28  ;;  %1372 = vst [vmem:[%s2612_s19 + $0x1a0] sm:$0xff] %v1260_v32  ;;  %v973_v35 = vmul.f32 %v861_v54, %v3393_v20  ;;  %v974_v4 = vmul.f32 %v862_v43, %v3394_v22  ;;  %v975_v60 = vmul.f32 %v863_v27, %v2546_v30 }
 0x12a   : > { %v1740_v44 = vpop.eup %1739  ;;  %v1263_v59 = vmul.f32 %v1738_v39, %v3332_v0  ;;  %1373 = vst [vmem:[%s2612_s19 + $0x1a8] sm:$0xff] %v1261_v56  ;;  %v976_v11 = vmul.f32 %v864_v1, %v3395_v46  ;;  %v977_v10 = vmul.f32 %v865_v7, %v3396_v34  ;;  %v1176_v29 = vmul.f32 1.442695, %v968_v36 }
 0x12b   : > { %v1742_v37 = vpop.eup %1741  ;;  %v1264_v16 = vmul.f32 %v1740_v44, %v3333_v5  ;;  %1374 = vst [vmem:[%s2612_s19 + $0x1b0] sm:$0xff] %v1262_v50  ;;  %v1178_v6 = vmul.f32 1.442695, %v969_v18  ;;  %v978_v22 = vmul.f32 %v866_v52, %v3397_v61  ;;  %v1180_v43 = vmul.f32 1.442695, %v970_v57 }
 0x12c   : > { %v1744_v20 = vpop.eup %1743  ;;  %v1265_v54 = vmul.f32 %v1742_v37, %v3334_v40  ;;  %1375 = vst [vmem:[%s2612_s19 + $0x1b8] sm:$0xff] %v1263_v59  ;;  %v1182_v30 = vmul.f32 1.442695, %v971_v9  ;;  %v979_v1 = vmul.f32 %v867_v3, %v3398_v49  ;;  %1755 = vpow2.f32 %v1176_v29  ;;  %v634_v3 = vpop.permute.xlu0 %633  ;;  %v3405_v59 = vld [vmem:[#allocation51_spill] sm:$0xff]  ;;  %v3408_v29 = vld [vmem:[#allocation54_spill] sm:$0xff] }
 0x12d   : > { %v1746_v27 = vpop.eup %1745  ;;  %v1266_v46 = vmul.f32 %v1744_v20, %v3335_v19  ;;  %1376 = vst [vmem:[%s2612_s19 + $0x1c0] sm:$0xff] %v1264_v16  ;;  %v1184_v34 = vmul.f32 1.442695, %v972_v2  ;;  %v980_v26 = vmul.f32 %v868_v17, %v3399_v13  ;;  %1757 = vpow2.f32 %v1178_v6  ;;  %v3407_v16 = vld [vmem:[#allocation53_spill] sm:$0xff] }
 0x12e   : > { %v1748_v7 = vpop.eup %1747  ;;  %v1267_v25 = vmul.f32 %v1746_v27, %v3336_v48  ;;  %1377 = vst [vmem:[%s2612_s19 + $0x1c8] sm:$0xff] %v1265_v54  ;;  %v1186_v61 = vmul.f32 1.442695, %v973_v35  ;;  %v981_v41 = vmul.f32 %v869_v33, %v3400_v47  ;;  %1759 = vpow2.f32 %v1180_v43  ;;  %v3404_v35 = vld [vmem:[#allocation50_spill] sm:$0xff] }
 0x12f   : > { %v1750_v52 = vpop.eup %1749  ;;  %v1268_v31 = vmul.f32 %v1748_v7, %v3337_v12  ;;  %1378 = vst [vmem:[%s2612_s19 + $0x1d0] sm:$0xff] %v1266_v46  ;;  %v1188_v49 = vmul.f32 1.442695, %v974_v4  ;;  %v982_v13 = vmul.f32 %v870_v15, %v3401_v14  ;;  %1761 = vpow2.f32 %v1182_v30  ;;  %v3410_v30 = vld [vmem:[#allocation56_spill] sm:$0xff] }
 0x130   : > { %v1752_v21 = vpop.eup %1751  ;;  %v1269_v32 = vmul.f32 %v1750_v52, %v3338_v24  ;;  %1379 = vst [vmem:[%s2612_s19 + $0x1d8] sm:$0xff] %v1267_v25  ;;  %v1190_v17 = vmul.f32 1.442695, %v975_v60  ;;  %v983_v47 = vmul.f32 %v871_v58, %v3402_v63  ;;  %1763 = vpow2.f32 %v1184_v34  ;;  %v3403_v58 = vld [vmem:[#allocation49_spill] sm:$0xff]  ;;  %v3412_v25 = vld [vmem:[#allocation58_spill] sm:$0xff] }
 0x131   : > { %v1754_v36 = vpop.eup %1753  ;;  %v1270_v18 = vmul.f32 %v1752_v21, %v3339_v62  ;;  %1380 = vst [vmem:[%s2612_s19 + $0x1e0] sm:$0xff] %v1268_v31  ;;  %v1192_v33 = vmul.f32 1.442695, %v976_v11  ;;  %1765 = vpow2.f32 %v1186_v61  ;;  %v1194_v56 = vmul.f32 1.442695, %v977_v10  ;;  %v3406_v11 = vld [vmem:[#allocation52_spill] sm:$0xff] }
 0x132   : > { %v1271_v8 = vmul.f32 %v1754_v36, %v3340_v23  ;;  %1381 = vst [vmem:[%s2612_s19 + $0x1e8] sm:$0xff] %v1269_v32  ;;  %v2952_v57 = vsub.f32 0.0, %v634_v3  ;;  %1767 = vpow2.f32 %v1188_v49  ;;  %v1196_v14 = vmul.f32 1.442695, %v978_v22  ;;  %v3409_v22 = vld [vmem:[#allocation55_spill] sm:$0xff]  ;;  %v3411_v34 = vld [vmem:[#allocation57_spill] sm:$0xff] }
 0x133   : > { %1382 = vst [vmem:[%s2612_s19 + $0x1f0] sm:$0xff] %v1270_v18  ;;  %1769 = vpow2.f32 %v1190_v17  ;;  %v1198_v15 = vmul.f32 1.442695, %v979_v1  ;;  %v1200_v9 = vmul.f32 1.442695, %v980_v26  ;;  %v3413_v31 = vld [vmem:[#allocation59_spill] sm:$0xff] }
 0x134   : > { %1383 = vst [vmem:[%s2612_s19 + $0x1f8] sm:$0xff] %v1271_v8  ;;  %1771 = vpow2.f32 %v1192_v33  ;;  %v1202_v39 = vmul.f32 1.442695, %v981_v41  ;;  %v1204_v50 = vmul.f32 1.442695, %v982_v13  ;;  %v840_v2 = vmul.f32 %v2952_v57, %v3403_v58  ;;  %v3414_v18 = vld [vmem:[#allocation60_spill] sm:$0xff] }
 0x135   : > { %v1206_v63 = vmul.f32 1.442695, %v983_v47  ;;  %1773 = vpow2.f32 %v1194_v56  ;;  %v841_v44 = vmul.f32 %v2952_v57, %v3404_v35  ;;  %v842_v4 = vmul.f32 %v2952_v57, %v3405_v59 }
 0x136   : > { %v1756_v60 = vpop.eup %1755  ;;  %1775 = vpow2.f32 %v1196_v14  ;;  %v843_v37 = vmul.f32 %v2952_v57, %v3406_v11  ;;  %v844_v10 = vmul.f32 %v2952_v57, %v3407_v16  ;;  %v845_v6 = vmul.f32 %v2952_v57, %v3408_v29  ;;  %v3415_v14 = vld [vmem:[#allocation61_spill] sm:$0xff] }
 0x137   : > { %v1758_v20 = vpop.eup %1757  ;;  %1777 = vpow2.f32 %v1198_v15  ;;  %v1304_v54 = vmul.f32 %v1756_v60, %v2148_v51  ;;  %v846_v43 = vmul.f32 %v2952_v57, %v3409_v22  ;;  %v847_v27 = vmul.f32 %v2952_v57, %v3410_v30 }
 0x138   : > { %v1760_v46 = vpop.eup %1759  ;;  %1779 = vpow2.f32 %v1200_v9  ;;  %v1305_v1 = vmul.f32 %v1758_v20, %v2156_v55  ;;  %v848_v7 = vmul.f32 %v2952_v57, %v3411_v34  ;;  %v849_v26 = vmul.f32 %v2952_v57, %v3412_v25  ;;  %v3416_v9 = vld [vmem:[#allocation62_spill] sm:$0xff] }
 0x139   : > { %v1762_v61 = vpop.eup %1761  ;;  %1781 = vpow2.f32 %v1202_v39  ;;  %v1306_v52 = vmul.f32 %v1760_v46, %v3322_v42  ;;  %1416 = vst [vmem:[%s2612_s19 + $0x300] sm:$0x3] %v1304_v54  ;;  %v850_v41 = vmul.f32 %v2952_v57, %v3413_v31  ;;  %v952_v49 = vmul.f32 %v840_v2, %v3403_v58  ;;  %v3417_v2 = vld [vmem:[#allocation63_spill] sm:$0xff]  ;;  %v3418_v54 = vld [vmem:[#allocation64_spill] sm:$0xff] }
 0x13a   : > { %v1764_v3 = vpop.eup %1763  ;;  %1783 = vpow2.f32 %v1204_v50  ;;  %v1307_v21 = vmul.f32 %v1762_v61, %v3325_v38  ;;  %1417 = vst [vmem:[%s2612_s19 + $0x308] sm:$0x3] %v1305_v1  ;;  %v953_v32 = vmul.f32 %v841_v44, %v3404_v35  ;;  %v954_v13 = vmul.f32 %v842_v4, %v3405_v59 }
 0x13b   : > { %v1766_v17 = vpop.eup %1765  ;;  %1785 = vpow2.f32 %v1206_v63  ;;  %v1308_v36 = vmul.f32 %v1764_v3, %v3328_v45  ;;  %1418 = vst [vmem:[%s2612_s19 + $0x310] sm:$0x3] %v1306_v52  ;;  %v851_v47 = vmul.f32 %v2952_v57, %v3414_v18  ;;  %v955_v33 = vmul.f32 %v843_v37, %v3406_v11 }
 0x13c   : > { %v1768_v8 = vpop.eup %1767  ;;  %v1309_v56 = vmul.f32 %v1766_v17, %v3329_v53  ;;  %1419 = vst [vmem:[%s2612_s19 + $0x318] sm:$0x3] %v1307_v21  ;;  %v852_v15 = vmul.f32 %v2952_v57, %v3415_v14  ;;  %v853_v39 = vmul.f32 %v2952_v57, %v3416_v9  ;;  %v956_v50 = vmul.f32 %v844_v10, %v3407_v16 }
 0x13d   : > { %v1770_v63 = vpop.eup %1769  ;;  %v1310_v58 = vmul.f32 %v1768_v8, %v3331_v28  ;;  %1420 = vst [vmem:[%s2612_s19 + $0x320] sm:$0x3] %v1308_v36  ;;  %v854_v35 = vmul.f32 %v2952_v57, %v3417_v2  ;;  %v957_v44 = vmul.f32 %v845_v6, %v3408_v29  ;;  %v958_v59 = vmul.f32 %v846_v43, %v3409_v22 }
 0x13e   : > { %v1772_v4 = vpop.eup %1771  ;;  %v1311_v60 = vmul.f32 %v1770_v63, %v3332_v0  ;;  %1421 = vst [vmem:[%s2612_s19 + $0x328] sm:$0x3] %v1309_v56  ;;  %v1144_v11 = vmul.f32 1.442695, %v952_v49  ;;  %v1146_v37 = vmul.f32 1.442695, %v953_v32  ;;  %v855_v46 = vmul.f32 %v2952_v57, %v3418_v54 }
 0x13f   : > { %v1148_v16 = vmul.f32 1.442695, %v954_v13  ;;  %v1774_v10 = vpop.eup %1773  ;;  %v1312_v20 = vmul.f32 %v1772_v4, %v3333_v5  ;;  %1422 = vst [vmem:[%s2612_s19 + $0x330] sm:$0x3] %v1310_v58  ;;  %v959_v29 = vmul.f32 %v847_v27, %v3410_v30  ;;  %v1150_v6 = vmul.f32 1.442695, %v955_v33 }
 0x140   : > { %v1776_v22 = vpop.eup %1775  ;;  %v1313_v43 = vmul.f32 %v1774_v10, %v3334_v40  ;;  %1423 = vst [vmem:[%s2612_s19 + $0x338] sm:$0x3] %v1311_v60  ;;  %v960_v1 = vmul.f32 %v848_v7, %v3411_v34  ;;  %1787 = vpow2.f32 %v1144_v11  ;;  %v1152_v61 = vmul.f32 1.442695, %v956_v50 }
 0x141   : > { %v1778_v52 = vpop.eup %1777  ;;  %v1314_v49 = vmul.f32 %v1776_v22, %v3335_v19  ;;  %1424 = vst [vmem:[%s2612_s19 + $0x340] sm:$0x3] %v1312_v20  ;;  %v961_v3 = vmul.f32 %v849_v26, %v3412_v25  ;;  %1789 = vpow2.f32 %v1146_v37  ;;  %v1154_v57 = vmul.f32 1.442695, %v957_v44 }
 0x142   : > { %v1780_v30 = vpop.eup %1779  ;;  %v1315_v27 = vmul.f32 %v1778_v52, %v3336_v48  ;;  %1425 = vst [vmem:[%s2612_s19 + $0x348] sm:$0x3] %v1313_v43  ;;  %v962_v21 = vmul.f32 %v850_v41, %v3413_v31  ;;  %1791 = vpow2.f32 %v1148_v16  ;;  %v1156_v34 = vmul.f32 1.442695, %v958_v59 }
 0x143   : > { %v1782_v7 = vpop.eup %1781  ;;  %v1316_v32 = vmul.f32 %v1780_v30, %v3337_v12  ;;  %1426 = vst [vmem:[%s2612_s19 + $0x350] sm:$0x3] %v1314_v49  ;;  %v963_v13 = vmul.f32 %v851_v47, %v3414_v18  ;;  %1793 = vpow2.f32 %v1150_v6  ;;  %v1158_v25 = vmul.f32 1.442695, %v959_v29 }
 0x144   : > { %v1784_v26 = vpop.eup %1783  ;;  %v1317_v17 = vmul.f32 %v1782_v7, %v3338_v24  ;;  %1427 = vst [vmem:[%s2612_s19 + $0x358] sm:$0x3] %v1315_v27  ;;  %v964_v36 = vmul.f32 %v852_v15, %v3415_v14  ;;  %1795 = vpow2.f32 %v1152_v61  ;;  %v1160_v31 = vmul.f32 1.442695, %v960_v1 }
 0x145   : > { %v1786_v41 = vpop.eup %1785  ;;  %v1318_v33 = vmul.f32 %v1784_v26, %v3339_v62  ;;  %1428 = vst [vmem:[%s2612_s19 + $0x360] sm:$0x3] %v1316_v32  ;;  %v965_v8 = vmul.f32 %v853_v39, %v3416_v9  ;;  %1797 = vpow2.f32 %v1154_v57  ;;  %v1162_v18 = vmul.f32 1.442695, %v961_v3 }
 0x146   : > { %v1319_v47 = vmul.f32 %v1786_v41, %v3340_v23  ;;  %1429 = vst [vmem:[%s2612_s19 + $0x368] sm:$0x3] %v1317_v17  ;;  %v966_v56 = vmul.f32 %v854_v35, %v3417_v2  ;;  %1799 = vpow2.f32 %v1156_v34  ;;  %v1164_v50 = vmul.f32 1.442695, %v962_v21 }
 0x147   : > { %1430 = vst [vmem:[%s2612_s19 + $0x370] sm:$0x3] %v1318_v33  ;;  %v967_v14 = vmul.f32 %v855_v46, %v3418_v54  ;;  %1801 = vpow2.f32 %v1158_v25  ;;  %v1166_v15 = vmul.f32 1.442695, %v963_v13  ;;  %v1168_v63 = vmul.f32 1.442695, %v964_v36 }
 0x148   : > { %1431 = vst [vmem:[%s2612_s19 + $0x378] sm:$0x3] %v1319_v47  ;;  %1803 = vpow2.f32 %v1160_v31  ;;  %v1170_v9 = vmul.f32 1.442695, %v965_v8  ;;  %v1172_v58 = vmul.f32 1.442695, %v966_v56 }
 0x149   : > { %1805 = vpow2.f32 %v1162_v18  ;;  %v1174_v2 = vmul.f32 1.442695, %v967_v14 }
 0x14a   : > { %v1788_v39 = vpop.eup %1787  ;;  %1807 = vpow2.f32 %v1164_v50 }
 0x14b   : > { %v1790_v44 = vpop.eup %1789  ;;  %1809 = vpow2.f32 %v1166_v15  ;;  %v1288_v35 = vmul.f32 %v1788_v39, %v2148_v51 }
 0x14c   : > { %v1792_v59 = vpop.eup %1791  ;;  %1811 = vpow2.f32 %v1168_v63  ;;  %v1289_v4 = vmul.f32 %v1790_v44, %v2156_v55 }
 0x14d   : > { %v1794_v60 = vpop.eup %1793  ;;  %1813 = vpow2.f32 %v1170_v9  ;;  %v1290_v11 = vmul.f32 %v1792_v59, %v3322_v42  ;;  %1400 = vst [vmem:[%s2612_s19 + $0x280] sm:$0xff] %v1288_v35 }
 0x14e   : > { %v1796_v37 = vpop.eup %1795  ;;  %1815 = vpow2.f32 %v1172_v58  ;;  %v1291_v16 = vmul.f32 %v1794_v60, %v3325_v38  ;;  %1401 = vst [vmem:[%s2612_s19 + $0x288] sm:$0xff] %v1289_v4 }
 0x14f   : > { %v1798_v10 = vpop.eup %1797  ;;  %1817 = vpow2.f32 %v1174_v2  ;;  %v1292_v51 = vmul.f32 %v1796_v37, %v3328_v45  ;;  %1402 = vst [vmem:[%s2612_s19 + $0x290] sm:$0xff] %v1290_v11 }
 0x150   : > { %v1800_v55 = vpop.eup %1799  ;;  %v1293_v20 = vmul.f32 %v1798_v10, %v3329_v53  ;;  %1403 = vst [vmem:[%s2612_s19 + $0x298] sm:$0xff] %v1291_v16 }
 0x151   : > { %v1802_v42 = vpop.eup %1801  ;;  %v1294_v54 = vmul.f32 %v1800_v55, %v3331_v28  ;;  %1404 = vst [vmem:[%s2612_s19 + $0x2a0] sm:$0xff] %v1292_v51 }
 0x152   : > { %v1804_v38 = vpop.eup %1803  ;;  %v1295_v46 = vmul.f32 %v1802_v42, %v3332_v0  ;;  %1405 = vst [vmem:[%s2612_s19 + $0x2a8] sm:$0xff] %v1293_v20 }
 0x153   : > { %v1806_v29 = vpop.eup %1805  ;;  %v1296_v45 = vmul.f32 %v1804_v38, %v3333_v5  ;;  %1406 = vst [vmem:[%s2612_s19 + $0x2b0] sm:$0xff] %v1294_v54 }
 0x154   : > { %v1808_v6 = vpop.eup %1807  ;;  %v1297_v53 = vmul.f32 %v1806_v29, %v3334_v40  ;;  %1407 = vst [vmem:[%s2612_s19 + $0x2b8] sm:$0xff] %v1295_v46 }
 0x155   : > { %v1810_v22 = vpop.eup %1809  ;;  %v1298_v28 = vmul.f32 %v1808_v6, %v3335_v19  ;;  %1408 = vst [vmem:[%s2612_s19 + $0x2c0] sm:$0xff] %v1296_v45 }
 0x156   : > { %v1812_v43 = vpop.eup %1811  ;;  %v1299_v0 = vmul.f32 %v1810_v22, %v3336_v48  ;;  %1409 = vst [vmem:[%s2612_s19 + $0x2c8] sm:$0xff] %v1297_v53 }
 0x157   : > { %v1814_v5 = vpop.eup %1813  ;;  %v1300_v1 = vmul.f32 %v1812_v43, %v3337_v12  ;;  %1410 = vst [vmem:[%s2612_s19 + $0x2d0] sm:$0xff] %v1298_v28 }
 0x158   : > { %v1816_v40 = vpop.eup %1815  ;;  %v1301_v19 = vmul.f32 %v1814_v5, %v3338_v24  ;;  %1411 = vst [vmem:[%s2612_s19 + $0x2d8] sm:$0xff] %v1299_v0 }
 0x159   : > { %v1818_v48 = vpop.eup %1817  ;;  %v1302_v61 = vmul.f32 %v1816_v40, %v3339_v62  ;;  %1412 = vst [vmem:[%s2612_s19 + $0x2e0] sm:$0xff] %v1300_v1 }
 0x15a   : > { %v1303_v12 = vmul.f32 %v1818_v48, %v3340_v23  ;;  %1413 = vst [vmem:[%s2612_s19 + $0x2e8] sm:$0xff] %v1301_v19 }
 0x15b   : > { %1414 = vst [vmem:[%s2612_s19 + $0x2f0] sm:$0xff] %v1302_v61 }
 0x15c   : > { %1415 = vst [vmem:[%s2612_s19 + $0x2f8] sm:$0xff] %v1303_v12 }
 0x15d   : > { %1832 = shalt.err (!%p1829_p3)
}
 0x15e   : > { %s1833_s5 = scalar_lea.hbm %s3067_s26, 14336  ;;  %s1837_s8 = scalar_lea.hbm %s3123_s3, 28672 }
 0x15f   : > { %p1834_p4 = scmp.ne.s32.totalorder %s3067_s26, %s1833_s5  ;;  %p1838_p9 = scmp.lt.u32.totalorder %s3067_s26, %s3123_s3 }
 0x160   : > { %p1839_p10 = scmp.lt.u32.totalorder %s1837_s8, %s1833_s5  ;;  %p1841_p12 = scmp.lt.u32.totalorder %s1833_s5, %s3067_s26 }
 0x161   : > { %p1835_p7 = pnand %p1834_p4, %p1952_p5 }
 0x162   : > { %p1840_p11 = por %p1839_p10, %p1838_p9 }
 0x163   : > { %p1836_p8 = pneg %p1835_p7 }
 0x164   : > { %p1842_p13 = por %p1841_p12, %p1840_p11 }
 0x166   : > { %p1843_p0 = pnand %p1842_p13, %p1836_p8 }
 0x168   : > { %1846 = shalt.err (!%p1843_p0)
}
 0x169   : > { %s1891_s11 = smov 2048   ;;  %s1892_s17 = smov 4096  }
 0x16a   : > { %s1893_s19 = smov 128  }
 0x16b   : > { %1532 = dma.vmem_to_hbm [thread:$0]  (%p1952_p5), %s3071_s24, 14336, %s3067_s26, %s3079_s27, %s1891_s11, %s1892_s17, %s1893_s19  }
 0x16c PF: > { %p1538_p1 = scmp.ge.s32.totalorder %s1881_s15, 2  ;;  %s1461_s20 = sand.u32 1, %s1869_s12  }
 0x16d   : > { %s1462_s25 = scalar_lea.sflag [#allocation3], %s1461_s20 }
 0x16e   : > { %p1535_p2 = pnand %p1538_p1, %p1956_p6 }
 0x170   : > { %1864 = dma.done.wait (!%p1535_p2), %s1462_s25, 14336  }
 0x171   : > { %1866 = vsyncadd (!%p1535_p2), %s1462_s25, 4294952960  ;;  %p13_p3 = scmp.ge.s32.totalorder %s1939_s18, 4   ;;  %s3419_s12 = smov %s1873_s13 }
 0x172   : > { %s3420_s13 = smov %s1877_s14  ;;  %s3421_s14 = smov %s1950_s21 }
 0x173   : > { %s3422_s15 = smov %s1939_s18  ;;  %15 = sbr.rel (!%p13_p3) target bundleno = 3 (0x3), region = 67 }
 0x17a   :  { %1467 = vsyncpa [#allocation3], 1 }
 0x17b   :  { %1469 = vsyncpa [#allocation3 + $0x1], 1 }

</bundles_post_ra>
